<compile_context>
chip_gen: v7x
topology: tpu7x:2x2x1
jax: 0.10.0
libtpu: 0.0.40
codegen_flags: <defaults>
</compile_context>

<pallas_src>
import functools

import jax
import jax.numpy as jnp
from jax.experimental import pallas as pl
from jax.experimental.pallas import tpu as pltpu


# ----------------------------------------------------------------------------
# Pallas kernel: fused 3x3 conv (tap-accumulating) + folded-BN bias + ReLU
# ----------------------------------------------------------------------------
def _conv_bn_relu_kernel(x_ref, w_ref, b_ref, o_ref, *,
                         kh, kw, stride, to, wo, nr, nc):
    """One (batch, row-tile) grid step.

    x_ref: (s*nr, s*nc, Cin)  bf16  phase-split, halo'd input tile
                              (row/col phases stored phase-major, so every tap
                               is a contiguous static slice)
    w_ref: (kh*kw, Cin, Cout) bf16  conv weights with BN scale folded in
    b_ref: (1, Cout)          f32   folded BN bias
    o_ref: (to*wo, Cout)      f32   output tile (to output rows x wo cols)
    """
    s = stride
    acc = None
    for di in range(kh):
        for dj in range(kw):
            r0 = (di % s) * nr + di // s          # static start inside row phase
            c0 = (dj % s) * nc + dj // s          # static start inside col phase
            patch = x_ref[pl.ds(r0, to), pl.ds(c0, wo), :]      # (to, wo, Cin)
            patch = patch.reshape(to * wo, patch.shape[-1])
            part = jnp.dot(patch, w_ref[di * kw + dj],
                           preferred_element_type=jnp.float32)  # MXU, f32 acc
            acc = part if acc is None else acc + part
    y = jnp.maximum(acc + b_ref[...], 0.0)                      # BN bias + ReLU
    o_ref[...] = y.astype(o_ref.dtype)


# ----------------------------------------------------------------------------
# Wrapper: BN folding, phase-split/halo relayout, pallas_call
# ----------------------------------------------------------------------------
def basic_block_forward(x_nchw, params, *, stride=1, eps=1e-3, row_tile=None,
                        vmem_tile_budget=2 * 1024 * 1024):
    """Fused BasicBlock forward.  x_nchw: (B, Cin, H, W) f32 (PyTorch layout).

    params: {'w': (Cout, Cin, 3, 3), 'gamma', 'beta', 'running_mean',
             'running_var': (Cout,)}.   Returns (B, Cout, Ho, Wo) f32.
    """
    # TODO(synk): BatchNorm is applied in inference mode (running stats folded
    # into the conv); training-mode batch statistics are not computed.
    w_oihw = params['w'].astype(jnp.float32)
    Cout, Cin, kh, kw = w_oihw.shape
    s = int(stride)
    pad = 1

    # ---- fold eval-mode BN into the conv:  y = conv(x, w*scale) + bias ------
    scale = params['gamma'] / jnp.sqrt(params['running_var'] + eps)
    bias = params['beta'] - params['running_mean'] * scale
    w_hwio = jnp.transpose(w_oihw, (2, 3, 1, 0)) * scale         # (kh,kw,Cin,Cout)
    w_taps = w_hwio.reshape(kh * kw, Cin, Cout).astype(jnp.bfloat16)
    bias2 = bias.reshape(1, Cout).astype(jnp.float32)

    # ---- NCHW -> NHWC (channels on the lane dim), pad once, cast to bf16 ----
    x = jnp.transpose(x_nchw, (0, 2, 3, 1)).astype(jnp.float32)
    B, H, W, _ = x.shape
    Ho = (H + 2 * pad - kh) // s + 1
    Wo = (W + 2 * pad - kw) // s + 1
    Hp, Wp = H + 2 * pad, W + 2 * pad
    xp = jnp.pad(x, ((0, 0), (pad, pad), (pad, pad), (0, 0))).astype(jnp.bfloat16)

    # ---- choose output-row tile size against a per-step VMEM budget ---------
    nro, nco = (kh - 1) // s, (kw - 1) // s   # max tap offset within a phase
    Nc = Wo + nco                             # cols per column-phase
    if row_tile is None:
        row_tile = 1
        for cand in range(Ho, 0, -1):
            in_bytes = s * (cand + nro) * s * Nc * Cin * 2       # bf16 input tile
            out_bytes = cand * Wo * Cout * 4                     # f32 output tile
            if 2 * (in_bytes + out_bytes) <= vmem_tile_budget:   # double-buffered
                row_tile = cand
                break
    to = max(1, min(int(row_tile), Ho))
    T = -(-Ho // to)                          # ceil-div; output rows padded to T*to
    Nr = to + nro                             # rows per row-phase per tile

    # ---- phase-split ("sub-pixel"), halo'd gather of the padded input -------
    # tile t, row-phase p, slot i  ->  padded row  t*to*s + p + s*i
    row_idx = (jnp.arange(T)[:, None, None] * (to * s)
               + jnp.arange(s)[None, :, None]
               + s * jnp.arange(Nr)[None, None, :])              # (T, s, Nr)
    row_idx = jnp.minimum(row_idx, Hp - 1)                       # pad rows clamp
    col_idx = jnp.arange(s)[:, None] + s * jnp.arange(Nc)[None, :]   # (s, Nc)
    col_idx = jnp.minimum(col_idx, Wp - 1)
    xh = xp[:, row_idx[:, :, :, None, None],
            col_idx[None, None, None, :, :], :]    # (B, T, s, Nr, s, Nc, Cin)
    xh = xh.reshape(B, T, s * Nr, s * Nc, Cin)     # phase-major, free reshape

    kernel = functools.partial(_conv_bn_relu_kernel, kh=kh, kw=kw, stride=s,
                               to=to, wo=Wo, nr=Nr, nc=Nc)
    out = pl.pallas_call(
        kernel,
        out_shape=jax.ShapeDtypeStruct((B, T, to * Wo, Cout), jnp.float32),
        grid_spec=pltpu.PrefetchScalarGridSpec(
            num_scalar_prefetch=0,
            grid=(B, T),
            in_specs=[
                pl.BlockSpec((None, None, s * Nr, s * Nc, Cin),
                             lambda b, t: (b, t, 0, 0, 0)),
                pl.BlockSpec((kh * kw, Cin, Cout), lambda b, t: (0, 0, 0)),
                pl.BlockSpec((1, Cout), lambda b, t: (0, 0)),
            ],
            out_specs=pl.BlockSpec((None, None, to * Wo, Cout),
                                   lambda b, t: (b, t, 0, 0)),
        ),
        compiler_params=pltpu.CompilerParams(
            dimension_semantics=("parallel", "parallel"),
            vmem_limit_bytes=32 * 1024 * 1024,
        ),
    )(xh, w_taps, bias2)

    y = out.reshape(B, T * to, Wo, Cout)[:, :Ho]                 # (B, Ho, Wo, Cout)
    return jnp.transpose(y, (0, 3, 1, 2))                        # back to NCHW


# ----------------------------------------------------------------------------
# Pure-JAX reference (same bf16 quantization of x / folded w, f32 accumulate)
# ----------------------------------------------------------------------------
def basic_block_reference(x_nchw, params, *, stride=1, eps=1e-3):
    scale = params['gamma'] / jnp.sqrt(params['running_var'] + eps)
    bias = params['beta'] - params['running_mean'] * scale
    w = jnp.transpose(params['w'].astype(jnp.float32), (2, 3, 1, 0)) * scale
    w = w.astype(jnp.bfloat16).astype(jnp.float32)               # HWIO
    x = jnp.transpose(x_nchw, (0, 2, 3, 1)).astype(jnp.bfloat16).astype(jnp.float32)
    y = jax.lax.conv_general_dilated(
        x, w, window_strides=(stride, stride), padding=((1, 1), (1, 1)),
        dimension_numbers=('NHWC', 'HWIO', 'NHWC'),
        precision=jax.lax.Precision.HIGHEST)
    y = jnp.maximum(y + bias, 0.0)
    return jnp.transpose(y, (0, 3, 1, 2))


# ----------------------------------------------------------------------------
# Deterministic synthetic parameters
# ----------------------------------------------------------------------------
def init_basic_block_params(key, idims, odims):
    k1, k2, k3, k4, k5 = jax.random.split(key, 5)
    w = jax.random.normal(k1, (odims, idims, 3, 3), jnp.float32) / (9.0 * idims) ** 0.5
    return {
        'w': w,
        'gamma': 1.0 + 0.1 * jax.random.normal(k2, (odims,), jnp.float32),
        'beta': 0.1 * jax.random.normal(k3, (odims,), jnp.float32),
        'running_mean': 0.05 * jax.random.normal(k4, (odims,), jnp.float32),
        'running_var': 1.0 + 0.1 * jax.random.uniform(k5, (odims,), jnp.float32),
    }


# ----------------------------------------------------------------------------
# Main
# ----------------------------------------------------------------------------
if __name__ == "__main__":
    key = jax.random.PRNGKey(0)
    kx, kp1, kp2 = jax.random.split(key, 3)

    # BasicBlock(64, 64) at a small spatial size; stride=2 matches the multiview
    # backbone usage, stride=1 is the module default.
    B, Cin, Cout, H, W = 2, 64, 64, 16, 16
    x = jax.random.normal(kx, (B, Cin, H, W), jnp.float32)
    params_s2 = init_basic_block_params(kp1, Cin, Cout)
    params_s1 = init_basic_block_params(kp2, Cin, Cout)

    fwd_s2 = jax.jit(functools.partial(basic_block_forward, stride=2))
    fwd_s1 = jax.jit(functools.partial(basic_block_forward, stride=1))

    y2 = jax.block_until_ready(fwd_s2(x, params_s2))
    y1 = jax.block_until_ready(fwd_s1(x, params_s1))

    assert y2.shape == (B, Cout, 8, 8), y2.shape
    assert y1.shape == (B, Cout, 16, 16), y1.shape
    assert bool(jnp.all(jnp.isfinite(y2))) and bool(jnp.all(jnp.isfinite(y1)))

    r2 = basic_block_reference(x, params_s2, stride=2)
    r1 = basic_block_reference(x, params_s1, stride=1)
    err2 = float(jnp.max(jnp.abs(y2 - r2)))
    err1 = float(jnp.max(jnp.abs(y1 - r1)))
    assert err2 < 1e-2 and err1 < 1e-2, (err2, err1)

    print("KERNEL_OK")
</pallas_src>

<mosaic_0001>
module attributes {stable_mosaic.version = 11 : i64} {
  func.func @_conv_bn_relu_kernel(%arg0: i32, %arg1: i32, %arg2: memref<1x1x18x18x64xbf16, #tpu.memory_space<vmem>>, %arg3: memref<9x64x64xbf16, #tpu.memory_space<vmem>>, %arg4: memref<1x64xf32, #tpu.memory_space<vmem>>, %arg5: memref<1x1x64x64xf32, #tpu.memory_space<vmem>>) attributes {dimension_semantics = [#tpu.dimension_semantics<parallel>, #tpu.dimension_semantics<parallel>], iteration_bounds = array<i64: 2, 1>, scalar_prefetch = 0 : i64, scratch_operands = 0 : i64, tpu.core_type = #tpu.core_type<tc>, window_params = [{transform_indices = @transform_0, window_bounds = array<i64: 1, 1, 18, 18, 64>}, {pipeline_mode = #tpu.pipeline_mode<synchronous>, transform_indices = @transform_1, window_bounds = array<i64: 9, 64, 64>}, {pipeline_mode = #tpu.pipeline_mode<synchronous>, transform_indices = @transform_2, window_bounds = array<i64: 1, 64>}, {transform_indices = @transform_3, window_bounds = array<i64: 1, 1, 64, 64>}]} {
    %c0 = arith.constant 0 : index
    %c0_0 = arith.constant 0 : index
    %c0_1 = arith.constant 0 : index
    %c0_2 = arith.constant 0 : index
    %c0_3 = arith.constant 0 : index
    %0 = vector.load %arg2[%c0, %c0_0, %c0_1, %c0_2, %c0_3] : memref<1x1x18x18x64xbf16, #tpu.memory_space<vmem>>, vector<1x1x8x8x64xbf16>
    %1 = vector.shape_cast %0 : vector<1x1x8x8x64xbf16> to vector<8x8x64xbf16>
    %2 = vector.shape_cast %1 : vector<8x8x64xbf16> to vector<64x64xbf16>
    %c0_4 = arith.constant 0 : index
    %c0_5 = arith.constant 0 : index
    %c0_6 = arith.constant 0 : index
    %3 = vector.load %arg3[%c0_4, %c0_5, %c0_6] : memref<9x64x64xbf16, #tpu.memory_space<vmem>>, vector<1x64x64xbf16>
    %4 = vector.shape_cast %3 : vector<1x64x64xbf16> to vector<64x64xbf16>
    %cst = arith.constant dense<0.000000e+00> : vector<64x64xf32>
    %5 = tpu.matmul %2, %4, %cst {dimension_numbers = #tpu.dot_dimension_numbers<[1], [0], [0], [1], [0, 0, 1, 1], [], []>} : vector<64x64xbf16>, vector<64x64xbf16>, vector<64x64xf32> -> vector<64x64xf32>
    %c0_7 = arith.constant 0 : index
    %c0_8 = arith.constant 0 : index
    %c0_9 = arith.constant 0 : index
    %c9 = arith.constant 9 : index
    %c0_10 = arith.constant 0 : index
    %6 = vector.load %arg2[%c0_7, %c0_8, %c0_9, %c9, %c0_10] : memref<1x1x18x18x64xbf16, #tpu.memory_space<vmem>>, vector<1x1x8x8x64xbf16>
    %7 = vector.shape_cast %6 : vector<1x1x8x8x64xbf16> to vector<8x8x64xbf16>
    %8 = vector.shape_cast %7 : vector<8x8x64xbf16> to vector<64x64xbf16>
    %c1 = arith.constant 1 : index
    %c0_11 = arith.constant 0 : index
    %c0_12 = arith.constant 0 : index
    %9 = vector.load %arg3[%c1, %c0_11, %c0_12] : memref<9x64x64xbf16, #tpu.memory_space<vmem>>, vector<1x64x64xbf16>
    %10 = vector.shape_cast %9 : vector<1x64x64xbf16> to vector<64x64xbf16>
    %cst_13 = arith.constant dense<0.000000e+00> : vector<64x64xf32>
    %11 = tpu.matmul %8, %10, %cst_13 {dimension_numbers = #tpu.dot_dimension_numbers<[1], [0], [0], [1], [0, 0, 1, 1], [], []>} : vector<64x64xbf16>, vector<64x64xbf16>, vector<64x64xf32> -> vector<64x64xf32>
    %12 = arith.addf %5, %11 : vector<64x64xf32>
    %c0_14 = arith.constant 0 : index
    %c0_15 = arith.constant 0 : index
    %c0_16 = arith.constant 0 : index
    %c1_17 = arith.constant 1 : index
    %c0_18 = arith.constant 0 : index
    %13 = vector.load %arg2[%c0_14, %c0_15, %c0_16, %c1_17, %c0_18] : memref<1x1x18x18x64xbf16, #tpu.memory_space<vmem>>, vector<1x1x8x8x64xbf16>
    %14 = vector.shape_cast %13 : vector<1x1x8x8x64xbf16> to vector<8x8x64xbf16>
    %15 = vector.shape_cast %14 : vector<8x8x64xbf16> to vector<64x64xbf16>
    %c2 = arith.constant 2 : index
    %c0_19 = arith.constant 0 : index
    %c0_20 = arith.constant 0 : index
    %16 = vector.load %arg3[%c2, %c0_19, %c0_20] : memref<9x64x64xbf16, #tpu.memory_space<vmem>>, vector<1x64x64xbf16>
    %17 = vector.shape_cast %16 : vector<1x64x64xbf16> to vector<64x64xbf16>
    %cst_21 = arith.constant dense<0.000000e+00> : vector<64x64xf32>
    %18 = tpu.matmul %15, %17, %cst_21 {dimension_numbers = #tpu.dot_dimension_numbers<[1], [0], [0], [1], [0, 0, 1, 1], [], []>} : vector<64x64xbf16>, vector<64x64xbf16>, vector<64x64xf32> -> vector<64x64xf32>
    %19 = arith.addf %12, %18 : vector<64x64xf32>
    %c0_22 = arith.constant 0 : index
    %c0_23 = arith.constant 0 : index
    %c9_24 = arith.constant 9 : index
    %c0_25 = arith.constant 0 : index
    %c0_26 = arith.constant 0 : index
    %20 = vector.load %arg2[%c0_22, %c0_23, %c9_24, %c0_25, %c0_26] : memref<1x1x18x18x64xbf16, #tpu.memory_space<vmem>>, vector<1x1x8x8x64xbf16>
    %21 = vector.shape_cast %20 : vector<1x1x8x8x64xbf16> to vector<8x8x64xbf16>
    %22 = vector.shape_cast %21 : vector<8x8x64xbf16> to vector<64x64xbf16>
    %c3 = arith.constant 3 : index
    %c0_27 = arith.constant 0 : index
    %c0_28 = arith.constant 0 : index
    %23 = vector.load %arg3[%c3, %c0_27, %c0_28] : memref<9x64x64xbf16, #tpu.memory_space<vmem>>, vector<1x64x64xbf16>
    %24 = vector.shape_cast %23 : vector<1x64x64xbf16> to vector<64x64xbf16>
    %cst_29 = arith.constant dense<0.000000e+00> : vector<64x64xf32>
    %25 = tpu.matmul %22, %24, %cst_29 {dimension_numbers = #tpu.dot_dimension_numbers<[1], [0], [0], [1], [0, 0, 1, 1], [], []>} : vector<64x64xbf16>, vector<64x64xbf16>, vector<64x64xf32> -> vector<64x64xf32>
    %26 = arith.addf %19, %25 : vector<64x64xf32>
    %c0_30 = arith.constant 0 : index
    %c0_31 = arith.constant 0 : index
    %c9_32 = arith.constant 9 : index
    %c9_33 = arith.constant 9 : index
    %c0_34 = arith.constant 0 : index
    %27 = vector.load %arg2[%c0_30, %c0_31, %c9_32, %c9_33, %c0_34] : memref<1x1x18x18x64xbf16, #tpu.memory_space<vmem>>, vector<1x1x8x8x64xbf16>
    %28 = vector.shape_cast %27 : vector<1x1x8x8x64xbf16> to vector<8x8x64xbf16>
    %29 = vector.shape_cast %28 : vector<8x8x64xbf16> to vector<64x64xbf16>
    %c4 = arith.constant 4 : index
    %c0_35 = arith.constant 0 : index
    %c0_36 = arith.constant 0 : index
    %30 = vector.load %arg3[%c4, %c0_35, %c0_36] : memref<9x64x64xbf16, #tpu.memory_space<vmem>>, vector<1x64x64xbf16>
    %31 = vector.shape_cast %30 : vector<1x64x64xbf16> to vector<64x64xbf16>
    %cst_37 = arith.constant dense<0.000000e+00> : vector<64x64xf32>
    %32 = tpu.matmul %29, %31, %cst_37 {dimension_numbers = #tpu.dot_dimension_numbers<[1], [0], [0], [1], [0, 0, 1, 1], [], []>} : vector<64x64xbf16>, vector<64x64xbf16>, vector<64x64xf32> -> vector<64x64xf32>
    %33 = arith.addf %26, %32 : vector<64x64xf32>
    %c0_38 = arith.constant 0 : index
    %c0_39 = arith.constant 0 : index
    %c9_40 = arith.constant 9 : index
    %c1_41 = arith.constant 1 : index
    %c0_42 = arith.constant 0 : index
    %34 = vector.load %arg2[%c0_38, %c0_39, %c9_40, %c1_41, %c0_42] : memref<1x1x18x18x64xbf16, #tpu.memory_space<vmem>>, vector<1x1x8x8x64xbf16>
    %35 = vector.shape_cast %34 : vector<1x1x8x8x64xbf16> to vector<8x8x64xbf16>
    %36 = vector.shape_cast %35 : vector<8x8x64xbf16> to vector<64x64xbf16>
    %c5 = arith.constant 5 : index
    %c0_43 = arith.constant 0 : index
    %c0_44 = arith.constant 0 : index
    %37 = vector.load %arg3[%c5, %c0_43, %c0_44] : memref<9x64x64xbf16, #tpu.memory_space<vmem>>, vector<1x64x64xbf16>
    %38 = vector.shape_cast %37 : vector<1x64x64xbf16> to vector<64x64xbf16>
    %cst_45 = arith.constant dense<0.000000e+00> : vector<64x64xf32>
    %39 = tpu.matmul %36, %38, %cst_45 {dimension_numbers = #tpu.dot_dimension_numbers<[1], [0], [0], [1], [0, 0, 1, 1], [], []>} : vector<64x64xbf16>, vector<64x64xbf16>, vector<64x64xf32> -> vector<64x64xf32>
    %40 = arith.addf %33, %39 : vector<64x64xf32>
    %c0_46 = arith.constant 0 : index
    %c0_47 = arith.constant 0 : index
    %c1_48 = arith.constant 1 : index
    %c0_49 = arith.constant 0 : index
    %c0_50 = arith.constant 0 : index
    %41 = vector.load %arg2[%c0_46, %c0_47, %c1_48, %c0_49, %c0_50] : memref<1x1x18x18x64xbf16, #tpu.memory_space<vmem>>, vector<1x1x8x8x64xbf16>
    %42 = vector.shape_cast %41 : vector<1x1x8x8x64xbf16> to vector<8x8x64xbf16>
    %43 = vector.shape_cast %42 : vector<8x8x64xbf16> to vector<64x64xbf16>
    %c6 = arith.constant 6 : index
    %c0_51 = arith.constant 0 : index
    %c0_52 = arith.constant 0 : index
    %44 = vector.load %arg3[%c6, %c0_51, %c0_52] : memref<9x64x64xbf16, #tpu.memory_space<vmem>>, vector<1x64x64xbf16>
    %45 = vector.shape_cast %44 : vector<1x64x64xbf16> to vector<64x64xbf16>
    %cst_53 = arith.constant dense<0.000000e+00> : vector<64x64xf32>
    %46 = tpu.matmul %43, %45, %cst_53 {dimension_numbers = #tpu.dot_dimension_numbers<[1], [0], [0], [1], [0, 0, 1, 1], [], []>} : vector<64x64xbf16>, vector<64x64xbf16>, vector<64x64xf32> -> vector<64x64xf32>
    %47 = arith.addf %40, %46 : vector<64x64xf32>
    %c0_54 = arith.constant 0 : index
    %c0_55 = arith.constant 0 : index
    %c1_56 = arith.constant 1 : index
    %c9_57 = arith.constant 9 : index
    %c0_58 = arith.constant 0 : index
    %48 = vector.load %arg2[%c0_54, %c0_55, %c1_56, %c9_57, %c0_58] : memref<1x1x18x18x64xbf16, #tpu.memory_space<vmem>>, vector<1x1x8x8x64xbf16>
    %49 = vector.shape_cast %48 : vector<1x1x8x8x64xbf16> to vector<8x8x64xbf16>
    %50 = vector.shape_cast %49 : vector<8x8x64xbf16> to vector<64x64xbf16>
    %c7 = arith.constant 7 : index
    %c0_59 = arith.constant 0 : index
    %c0_60 = arith.constant 0 : index
    %51 = vector.load %arg3[%c7, %c0_59, %c0_60] : memref<9x64x64xbf16, #tpu.memory_space<vmem>>, vector<1x64x64xbf16>
    %52 = vector.shape_cast %51 : vector<1x64x64xbf16> to vector<64x64xbf16>
    %cst_61 = arith.constant dense<0.000000e+00> : vector<64x64xf32>
    %53 = tpu.matmul %50, %52, %cst_61 {dimension_numbers = #tpu.dot_dimension_numbers<[1], [0], [0], [1], [0, 0, 1, 1], [], []>} : vector<64x64xbf16>, vector<64x64xbf16>, vector<64x64xf32> -> vector<64x64xf32>
    %54 = arith.addf %47, %53 : vector<64x64xf32>
    %c0_62 = arith.constant 0 : index
    %c0_63 = arith.constant 0 : index
    %c1_64 = arith.constant 1 : index
    %c1_65 = arith.constant 1 : index
    %c0_66 = arith.constant 0 : index
    %55 = vector.load %arg2[%c0_62, %c0_63, %c1_64, %c1_65, %c0_66] : memref<1x1x18x18x64xbf16, #tpu.memory_space<vmem>>, vector<1x1x8x8x64xbf16>
    %56 = vector.shape_cast %55 : vector<1x1x8x8x64xbf16> to vector<8x8x64xbf16>
    %57 = vector.shape_cast %56 : vector<8x8x64xbf16> to vector<64x64xbf16>
    %c8 = arith.constant 8 : index
    %c0_67 = arith.constant 0 : index
    %c0_68 = arith.constant 0 : index
    %58 = vector.load %arg3[%c8, %c0_67, %c0_68] : memref<9x64x64xbf16, #tpu.memory_space<vmem>>, vector<1x64x64xbf16>
    %59 = vector.shape_cast %58 : vector<1x64x64xbf16> to vector<64x64xbf16>
    %cst_69 = arith.constant dense<0.000000e+00> : vector<64x64xf32>
    %60 = tpu.matmul %57, %59, %cst_69 {dimension_numbers = #tpu.dot_dimension_numbers<[1], [0], [0], [1], [0, 0, 1, 1], [], []>} : vector<64x64xbf16>, vector<64x64xbf16>, vector<64x64xf32> -> vector<64x64xf32>
    %61 = arith.addf %54, %60 : vector<64x64xf32>
    %c0_70 = arith.constant 0 : index
    %c0_71 = arith.constant 0 : index
    %62 = vector.load %arg4[%c0_70, %c0_71] : memref<1x64xf32, #tpu.memory_space<vmem>>, vector<1x64xf32>
    %63 = vector.broadcast %62 : vector<1x64xf32> to vector<64x64xf32>
    %64 = arith.addf %61, %63 : vector<64x64xf32>
    %cst_72 = arith.constant 0.000000e+00 : f32
    %65 = vector.broadcast %cst_72 : f32 to vector<64x64xf32>
    %66 = arith.maximumf %64, %65 : vector<64x64xf32>
    %c0_73 = arith.constant 0 : index
    %c0_74 = arith.constant 0 : index
    %c0_75 = arith.constant 0 : index
    %c0_76 = arith.constant 0 : index
    %67 = vector.load %arg5[%c0_73, %c0_74, %c0_75, %c0_76] : memref<1x1x64x64xf32, #tpu.memory_space<vmem>>, vector<1x1x64x64xf32>
    %68 = vector.shape_cast %67 : vector<1x1x64x64xf32> to vector<64x64xf32>
    %69 = vector.shape_cast %66 : vector<64x64xf32> to vector<1x1x64x64xf32>
    tpu.vector_store %arg5[%c0_73, %c0_74, %c0_75, %c0_76], %69 {strides = array<i32>} : memref<1x1x64x64xf32, #tpu.memory_space<vmem>>, vector<1x1x64x64xf32>,
    return
  }
  func.func @transform_0(%arg0: i32, %arg1: i32) -> (i32, i32, i32, i32, i32) {
    %c0_i32 = arith.constant 0 : i32
    %c0_i32_0 = arith.constant 0 : i32
    %c0_i32_1 = arith.constant 0 : i32
    %c0_i32_2 = arith.constant 0 : i32
    return %arg0, %arg1, %c0_i32, %c0_i32_0, %c0_i32_1 : i32, i32, i32, i32, i32
  }
  func.func @transform_1(%arg0: i32, %arg1: i32) -> (i32, i32, i32) {
    %c0_i32 = arith.constant 0 : i32
    %c0_i32_0 = arith.constant 0 : i32
    %c0_i32_1 = arith.constant 0 : i32
    %c0_i32_2 = arith.constant 0 : i32
    return %c0_i32, %c0_i32_0, %c0_i32_1 : i32, i32, i32
  }
  func.func @transform_2(%arg0: i32, %arg1: i32) -> (i32, i32) {
    %c0_i32 = arith.constant 0 : i32
    %c0_i32_0 = arith.constant 0 : i32
    %c0_i32_1 = arith.constant 0 : i32
    return %c0_i32, %c0_i32_0 : i32, i32
  }
  func.func @transform_3(%arg0: i32, %arg1: i32) -> (i32, i32, i32, i32) {
    %c0_i32 = arith.constant 0 : i32
    %c0_i32_0 = arith.constant 0 : i32
    %c0_i32_1 = arith.constant 0 : i32
    return %arg0, %arg1, %c0_i32, %c0_i32_0 : i32, i32, i32, i32
  }
}

</mosaic_0001>

<bundles_post_ra>
// kernel: basic_block_forward.1
= control target key start
LH: loop header
LB: loop body
LE: loop exit
PB: predicated region body
PF: predicated region fallthrough
CT: control target
= control target key end

     0   :  { %8 = vsyncpa [#allocation3], 0  ;;  %s3595_s0 = inlined_call_operand.vmem [shape: bf16[2,1,18,18,64], index: 0, kind: input, shape index: {}]   ;;  %s3596_s1 = inlined_call_operand.vmem [shape: bf16[9,64,64], index: 1, kind: input, shape index: {}]   ;;  %s3597_s2 = inlined_call_operand.vmem [shape: f32[1,64], index: 2, kind: input, shape index: {}]   ;;  %s3598_s3 = inlined_call_operand.hbm [shape: f32[2,1,64,64], index: 3, kind: output, shape index: {}]  }
   0x1   :  { %10 = vsyncpa [#allocation3 + $0x1], 0  ;;  %s3065_s12 = smov 0   ;;  %s3067_s13 = smov 0  }
   0x2   :  { %s3069_s14 = smov 0   ;;  %s3071_s15 = smov 0  }
   0x3   :  { %s3073_s16 = smov 0   ;;  %s3075_s17 = smov 0  }
   0x4 LB: > { %s2302_s18 = sadd.s32 4294967295, %s3040_s17   ;;  %s2303_s19 = sadd.s32 4294967294, %s3040_s17   ;;  %s3040_s17 = sphi %s3075_s17, %s16_s17   ;;  %s3036_s16 = sphi %s3073_s16, %s3607_s16   ;;  %s3032_s15 = sphi %s3071_s15, %s3606_s15   ;;  %s3028_s14 = sphi %s3069_s14, %s3605_s14   ;;  %s3024_s13 = sphi %s3067_s13, %s3604_s13   ;;  %s3020_s12 = sphi %s3065_s12, %s3603_s12  }
   0x5   : > { %s28_s20 = sadd.s32 1, %s3036_s16  ;;  %s107_s21 = sadd.s32 1, %s3028_s14 }
   0x6   : > { %p30_p0 = scmp.ge.s32.totalorder %s28_s20, 2  ;;  %p117_p1 = scmp.ne.s32.totalorder %s3028_s14, %s3024_s13 }
   0x7   : > { %p118_p2 = scmp.eq.s32.totalorder %s2302_s18, 1  ;;  %p123_p3 = scmp.ne.s32.totalorder %s3024_s13, %s3020_s12 }
   0x8   : > { %s3609_s20 = smov (%p30_p0, %s28_s20), 0  ;;  %p124_p5 = scmp.eq.s32.totalorder %s2303_s19, 1 }
   0x9   : > { %p3105_p4 = por %p118_p2, %p117_p1  ;;  %s102_s23 = ssub.s32 %s3036_s16, %s3609_s20 }
   0xa   : > { %p2306_p6 = scmp.ge.s32.totalorder %s3040_s17, 1  ;;  %p105_p7 = scmp.eq.s32.totalorder %s102_s23, 0 }
   0xb   : > { %p3112_p8 = por %p124_p5, %p123_p3  ;;  %p160_p9 = scmp.lt.s32.totalorder %s3040_s17, 3 }
   0xc   : > { %s3118_s25 = scalar_select %p105_p7, %s3028_s14, %s107_s21  }
   0xd   : > { %p161_p10 = pnand %p2306_p6, %p160_p9 }
   0xe   : > { %v2914_v0 = vld [vmem:[%s3596_s1 + $0x20] sm:$0xff] (!%p161_p10)   ;;  %p188_p11 = scmp.lt.s32.totalorder (!%p161_p10), %s3032_s15, 1  ;;  %v2916_v2 = vld [vmem:[%s3596_s1 + $0x28] sm:$0xff] (!%p161_p10)   ;;  %v2918_v4 = vld [vmem:[%s3596_s1 + $0x30] sm:$0xff] (!%p161_p10)   ;;  %vm230_vm0 = vsmask.f32 (!%p161_p10), 3328 }
   0xf   : > { %164 = sbr.rel (%p161_p10) target bundleno = 385 (0x181), region = 32  ;;  %v2915_v1 = vld [vmem:[%s3596_s1 + $0x80] sm:$0xff] (!%p161_p10)   ;;  %2640 = vmatprep.subr.bf16.mxu1 (!%p161_p10), %v2914_v0  ;;  %v2917_v3 = vld [vmem:[%s3596_s1 + $0x88] sm:$0xff] (!%p161_p10)   ;;  %v2919_v5 = vld [vmem:[%s3596_s1 + $0x90] sm:$0xff] (!%p161_p10)   ;;  %vm231_vm1 = vsmask.f32 (!%p161_p10), 7440 }
  0x10   : > { %2704 = vmatprep.subr.bf16.mxu0 (!%p161_p10), %v2915_v1  ;;  %2641 = vmatpush3.bf16.msra.mxu1 (!%p161_p10), %v2914_v0  ;;  %v2920_v6 = vld [vmem:[%s3596_s1 + $0x38] sm:$0xff] (!%p161_p10)   ;;  %vm390_vm2 = vcmask (!%p161_p10), 523264   ;;  %v3158_v18 = vld [vmem:[%s3596_s1] sm:$0xff] (!%p161_p10)   ;;  %vm3171_vm3 = vmor (!%p161_p10), %vm230_vm0, %vm231_vm1  ;;  %s2567_s23 = sshll.u32 (!%p161_p10), %s3032_s15, 10 }
  0x11   : > { %2705 = vmatpush3.bf16.msra.mxu0 (!%p161_p10), %v2915_v1  ;;  %2642 = vmatprep.subr.bf16.mxu1 (!%p161_p10), %v2916_v2  ;;  %v2921_v7 = vld [vmem:[%s3596_s1 + $0x98] sm:$0xff] (!%p161_p10)   ;;  %v3163_v19 = vld [vmem:[%s3596_s1 + $0xa0] sm:$0xff] (!%p161_p10)   ;;  %s3540_s30 = scalar_lea.hbm (!%p161_p10), %s3598_s3, %s2567_s23 }
  0x12   : > { %2706 = vmatprep.subr.bf16.mxu0 (!%p161_p10), %v2917_v3 }
  0x14   : > { %2643 = vmatpush3.bf16.msra.mxu1 (!%p161_p10), %v2916_v2 }
  0x15   : > { %2707 = vmatpush3.bf16.msra.mxu0 (!%p161_p10), %v2917_v3  ;;  %2644 = vmatprep.subr.bf16.mxu1 (!%p161_p10), %v2918_v4 }
  0x16   : > { %s189_s5 = scalar_select %p188_p11, %s3032_s15, 1  ;;  %2708 = vmatprep.subr.bf16.mxu0 %v2919_v5 }
  0x18   : > { %s2856_s10 = smul.u32 216, %s189_s5  ;;  %2645 = vmatpush3.bf16.msra.mxu1 %v2918_v4  ;;  %s3042_s5 = smov [#allocation2]  }
  0x19   : > { %2709 = vmatpush3.bf16.msra.mxu0 %v2919_v5  ;;  %2646 = vmatprep.subr.bf16.mxu1 %v2920_v6  ;;  %s2966_s6 = sshll.u32 %s3042_s5, 4  ;;  %s2967_s6 = int_to_ptr.vmem [resolvable:$false] %s2966_s6 }
  0x1a   : > { %s3146_s27 = scalar_lea.vmem %s3595_s0, %s2856_s10  ;;  %2710 = vmatprep.subr.bf16.mxu0 %v2921_v7  ;;  %s2968_s7 = scalar_lea.vmem %s2967_s6, 2048 }
  0x1b   : > { %v214_v8 = vld [vmem:[%s3146_s27 + $0x4] sm:$0xf]  ;;  %v215_v9 = vld [vmem:[%s3146_s27 + $0x8] sm:$0x1]  ;;  %v216_v10 = vld [vmem:[%s3146_s27 + $0x10] sm:$0xf] }
  0x1c   : > { %v217_v11 = vld [vmem:[%s3146_s27 + $0x14] sm:$0x1]  ;;  %v234_v12 = vshrl.u32 %v214_v8, 16  ;;  %v237_v13 = vshll.u32 %v214_v8, 16  ;;  %v243_v14 = vshll.u32 %v215_v9, 16  ;;  %v248_v15 = vshrl.u32 %v216_v10, 16  ;;  %2647 = vmatpush3.bf16.msra.mxu1 %v2920_v6 }
  0x1d   : > { %v251_v16 = vshll.u32 %v216_v10, 16  ;;  %v257_v17 = vshll.u32 %v217_v11, 16  ;;  %v2389_v24 = vld [vmem:[%s3146_s27 + $0x70] sm:$0xf]  ;;  %v2390_v27 = vld [vmem:[%s3146_s27 + $0x74] sm:$0x1]  ;;  %2711 = vmatpush3.bf16.msra.mxu0 %v2921_v7  ;;  %2656 = vmatprep.subr.bf16.mxu1 %v3158_v18 }
  0x1e   : > { %v236_v20 = vrot.slane %v234_v12, 4  ;;  %v239_v21 = vrot.slane %v237_v13, 5  ;;  %v245_v22 = vrot.slane %v243_v14, 5  ;;  %v250_v23 = vrot.slane %v248_v15, 4  ;;  %v2391_v28 = vld [vmem:[%s3146_s27 + $0x7c] sm:$0xf]  ;;  %2720 = vmatprep.subr.bf16.mxu0 %v3163_v19 }
  0x1f   : > { %v253_v25 = vrot.slane %v251_v16, 5  ;;  %v259_v26 = vrot.slane %v257_v17, 5  ;;  %v2392_v30 = vld [vmem:[%s3146_s27 + $0x80] sm:$0x1]  ;;  %v1011_v31 = vshrl.u32 %v2389_v24, 16  ;;  %v1014_v32 = vshll.u32 %v2389_v24, 16 }
  0x20   : > { %v240_v29 = vor.u32 %v239_v21, %v236_v20  ;;  %v1020_v33 = vshll.u32 %v2390_v27, 16  ;;  %v1025_v36 = vshrl.u32 %v2391_v28, 16  ;;  %v1028_v37 = vshll.u32 %v2391_v28, 16  ;;  %v218_v47 = vld [vmem:[%s3146_s27 + $0x1c] sm:$0xf] }
  0x21   : > { %v254_v35 = vor.u32 %v253_v25, %v250_v23  ;;  %v1034_v38 = vshll.u32 %v2392_v30, 16  ;;  %v1013_v40 = vrot.slane %v1011_v31, 4  ;;  %v1016_v41 = vrot.slane %v1014_v32, 5  ;;  %v219_v50 = vld [vmem:[%s3146_s27 + $0x20] sm:$0x1] }
  0x22   : > { %v241_v39 = vrot.slane %v240_v29, 4  ;;  %v1022_v42 = vrot.slane %v1020_v33, 5  ;;  %v1027_v44 = vrot.slane %v1025_v36, 4  ;;  %v1030_v45 = vrot.slane %v1028_v37, 5  ;;  %v220_v51 = vld [vmem:[%s3146_s27 + $0x28] sm:$0xf] }
  0x23   : > { %v255_v43 = vrot.slane %v254_v35, 4  ;;  %v1036_v46 = vrot.slane %v1034_v38, 5  ;;  %v1017_v49 = vor.u32 %v1016_v41, %v1013_v40  ;;  %v221_v52 = vld [vmem:[%s3146_s27 + $0x2c] sm:$0x1]  ;;  %v262_v55 = vshrl.u32 %v218_v47, 16 }
  0x24   : > { %v246_v48 = vsel %vm3171_vm3, %v241_v39, %v245_v22  ;;  %v1031_v54 = vor.u32 %v1030_v45, %v1027_v44  ;;  %v265_v56 = vshll.u32 %v218_v47, 16  ;;  %v2393_v57 = vld [vmem:[%s3146_s27 + $0x88] sm:$0xf]  ;;  %v2394_v58 = vld [vmem:[%s3146_s27 + $0x8c] sm:$0x1]  ;;  %v271_v61 = vshll.u32 %v219_v50, 16 }
  0x25   : > { %v260_v53 = vsel %vm3171_vm3, %v255_v43, %v259_v26  ;;  %v1018_v60 = vrot.slane %v1017_v49, 4  ;;  %v276_v62 = vshrl.u32 %v220_v51, 16  ;;  %v2395_v63 = vld [vmem:[%s3146_s27 + $0x94] sm:$0xf]  ;;  %v264_v1 = vrot.slane %v262_v55, 4  ;;  %v2924_v40 = vld [vmem:[%s3596_s1 + $0x8] sm:$0xff]  }
  0x26   : > { %v2317_v59 = vcombine.low %v246_v48, %v260_v53  ;;  %v1032_v0 = vrot.slane %v1031_v54, 4  ;;  %v267_v2 = vrot.slane %v265_v56, 5  ;;  %v279_v3 = vshll.u32 %v220_v51, 16  ;;  %v2396_v4 = vld [vmem:[%s3146_s27 + $0x98] sm:$0x1] }
  0x27   : > { %v1023_v5 = vsel %vm3171_vm3, %v1018_v60, %v1022_v42  ;;  %v273_v6 = vrot.slane %v271_v61, 5  ;;  %v278_v7 = vrot.slane %v276_v62, 4  ;;  %v285_v8 = vshll.u32 %v221_v52, 16  ;;  %v222_v23 = vld [vmem:[%s3146_s27 + $0x34] sm:$0xf]  ;;  %v2925_v60 = vld [vmem:[%s3596_s1 + $0xa8] sm:$0xff]  }
  0x28   : > { %2648 = vmatprep.mubr.msk.bf16.mxu1 %vm390_vm2, %v2317_v59  ;;  %v1037_v9 = vsel %vm3171_vm3, %v1032_v0, %v1036_v46  ;;  %v268_v10 = vor.u32 %v267_v2, %v264_v1  ;;  %v281_v11 = vrot.slane %v279_v3, 5  ;;  %v1039_v12 = vshrl.u32 %v2393_v57, 16  ;;  %v223_v28 = vld [vmem:[%s3146_s27 + $0x38] sm:$0x1]  ;;  %v224_v32 = vld [vmem:[%s3146_s27 + $0x40] sm:$0xf] }
  0x29   : > { %v2413_v13 = vcombine.low %v1023_v5, %v1037_v9  ;;  %v287_v14 = vrot.slane %v285_v8, 5  ;;  %v1042_v15 = vshll.u32 %v2393_v57, 16  ;;  %v1048_v16 = vshll.u32 %v2394_v58, 16  ;;  %v225_v33 = vld [vmem:[%s3146_s27 + $0x44] sm:$0x1] }
  0x2a   : > { %v269_v17 = vrot.slane %v268_v10, 4  ;;  %v282_v20 = vor.u32 %v281_v11, %v278_v7  ;;  %v1041_v21 = vrot.slane %v1039_v12, 4  ;;  %v1053_v22 = vshrl.u32 %v2395_v63, 16  ;;  %v2397_v48 = vld [vmem:[%s3146_s27 + $0xa0] sm:$0xf] }
  0x2b   : > { %2712 = vmatprep.mubr.msk.bf16.mxu0 %vm390_vm2, %v2413_v13  ;;  %v1044_v24 = vrot.slane %v1042_v15, 5  ;;  %v1050_v25 = vrot.slane %v1048_v16, 5  ;;  %v1056_v26 = vshll.u32 %v2395_v63, 16  ;;  %v1062_v27 = vshll.u32 %v2396_v4, 16  ;;  %v2398_v49 = vld [vmem:[%s3146_s27 + $0xa4] sm:$0x1] }
  0x2c   : > { %v274_v29 = vsel %vm3171_vm3, %v269_v17, %v273_v6  ;;  %v283_v30 = vrot.slane %v282_v20, 4  ;;  %v1055_v31 = vrot.slane %v1053_v22, 4  ;;  %v290_v38 = vshrl.u32 %v222_v23, 16  ;;  %v2399_v54 = vld [vmem:[%s3146_s27 + $0xac] sm:$0xf] }
  0x2d   : > { %v1045_v35 = vor.u32 %v1044_v24, %v1041_v21  ;;  %v1058_v36 = vrot.slane %v1056_v26, 5  ;;  %v1064_v37 = vrot.slane %v1062_v27, 5  ;;  %v293_v41 = vshll.u32 %v222_v23, 16  ;;  %v2400_v58 = vld [vmem:[%s3146_s27 + $0xb0] sm:$0x1] }
  0x2e   : > { %v288_v39 = vsel %vm3171_vm3, %v283_v30, %v287_v14  ;;  %v299_v42 = vshll.u32 %v223_v28, 16  ;;  %v304_v43 = vshrl.u32 %v224_v32, 16  ;;  %v292_v47 = vrot.slane %v290_v38, 4  ;;  %v226_v9 = vld [vmem:[%s3146_s27 + $0x4c] sm:$0xf]  ;;  %v2927_v24 = vld [vmem:[%s3596_s1 + $0xb0] sm:$0xff]  }
  0x2f   : > { %v2318_v44 = vcombine.low %v274_v29, %v288_v39  ;;  %v1046_v45 = vrot.slane %v1045_v35, 4  ;;  %v1059_v46 = vor.u32 %v1058_v36, %v1055_v31  ;;  %v295_v50 = vrot.slane %v293_v41, 5  ;;  %v227_v10 = vld [vmem:[%s3146_s27 + $0x50] sm:$0x1]  ;;  %v228_v15 = vld [vmem:[%s3146_s27 + $0x58] sm:$0xf] }
  0x30   : > { %v301_v51 = vrot.slane %v299_v42, 5  ;;  %v306_v52 = vrot.slane %v304_v43, 4  ;;  %v307_v53 = vshll.u32 %v224_v32, 16  ;;  %v313_v57 = vshll.u32 %v225_v33, 16  ;;  %v229_v21 = vld [vmem:[%s3146_s27 + $0x5c] sm:$0x1] }
  0x31   : > { %2649 = vmatmul.mubr.msk.bf16.vlgmr.msra.gmra.mrb[0].mxu1 %vm390_vm2, %v2318_v44  ;;  %v1051_v55 = vsel %vm3171_vm3, %v1046_v45, %v1050_v25  ;;  %v1060_v56 = vrot.slane %v1059_v46, 4  ;;  %v1067_v59 = vshrl.u32 %v2397_v48, 16  ;;  %v296_v61 = vor.u32 %v295_v50, %v292_v47  ;;  %v2401_v27 = vld [vmem:[%s3146_s27 + $0xb8] sm:$0xf]  ;;  %v2402_v32 = vld [vmem:[%s3146_s27 + $0xbc] sm:$0x1] }
  0x32   : > { %2657 = vmatpush3.bf16.msra.mxu1 %v3158_v18  ;;  %v309_v62 = vrot.slane %v307_v53, 5  ;;  %v1070_v63 = vshll.u32 %v2397_v48, 16  ;;  %v1076_v0 = vshll.u32 %v2398_v49, 16  ;;  %v315_v2 = vrot.slane %v313_v57, 5  ;;  %v2926_v18 = vld [vmem:[%s3596_s1 + $0x10] sm:$0xff]   ;;  %v2929_v44 = vld [vmem:[%s3596_s1 + $0xb8] sm:$0xff]  }
  0x33   : > { %v1065_v1 = vsel %vm3171_vm3, %v1060_v56, %v1064_v37  ;;  %2658 = vmatprep.subr.bf16.mxu1 %v2924_v40  ;;  %v1069_v3 = vrot.slane %v1067_v59, 4  ;;  %v1081_v4 = vshrl.u32 %v2399_v54, 16  ;;  %v297_v6 = vrot.slane %v296_v61, 4  ;;  %v2403_v38 = vld [vmem:[%s3146_s27 + $0xc4] sm:$0xf] }
  0x34   : > { %v2414_v5 = vcombine.low %v1051_v55, %v1065_v1  ;;  %v310_v7 = vor.u32 %v309_v62, %v306_v52  ;;  %v1072_v8 = vrot.slane %v1070_v63, 5  ;;  %v1078_v11 = vrot.slane %v1076_v0, 5  ;;  %v2404_v43 = vld [vmem:[%s3146_s27 + $0xc8] sm:$0x1]  ;;  %v3251_v49 = vld [vmem:[%s3596_s1 + $0x40] sm:$0xff]  }
  0x35   : > { %v1083_v12 = vrot.slane %v1081_v4, 4  ;;  %v1084_v13 = vshll.u32 %v2399_v54, 16  ;;  %v1090_v14 = vshll.u32 %v2400_v58, 16  ;;  %v302_v16 = vsel %vm3171_vm3, %v297_v6, %v301_v51  ;;  %v2426_v4 = vld [vmem:[%s3146_s27 + $0x70] sm:$0x1] }
  0x36   : > { %2713 = vmatmul.mubr.msk.bf16.vlgmr.msra.gmra.mrb[0].mxu0 %vm390_vm2, %v2414_v5  ;;  %2659 = vmatpush3.bf16.msra.mxu1 %v2924_v40  ;;  %v311_v17 = vrot.slane %v310_v7, 4  ;;  %v1073_v20 = vor.u32 %v1072_v8, %v1069_v3  ;;  %v318_v22 = vshrl.u32 %v226_v9, 16  ;;  %v321_v25 = vshll.u32 %v226_v9, 16  ;;  %v2425_v3 = vld [vmem:[%s3146_s27 + $0x6c] sm:$0xf]  ;;  %v3265_v5 = vld [vmem:[%s3596_s1 + $0xc0] sm:$0xff]  }
  0x37   : > { %2721 = vmatpush3.bf16.msra.mxu0 %v3163_v19  ;;  %2660 = vmatprep.subr.bf16.mxu1 %v2926_v18  ;;  %v1086_v23 = vrot.slane %v1084_v13, 5  ;;  %v327_v26 = vshll.u32 %v227_v10, 16  ;;  %v332_v31 = vshrl.u32 %v228_v15, 16  ;;  %v2928_v19 = vld [vmem:[%s3596_s1 + $0x18] sm:$0xff]   ;;  %v1092_v36 = vrot.slane %v1090_v14, 5 }
  0x38   : > { %2722 = vmatprep.subr.bf16.mxu0 %v2925_v60  ;;  %v316_v28 = vsel %vm3171_vm3, %v311_v17, %v315_v2  ;;  %v1074_v29 = vrot.slane %v1073_v20, 4  ;;  %v320_v30 = vrot.slane %v318_v22, 4  ;;  %v323_v37 = vrot.slane %v321_v25, 5  ;;  %v2427_v9 = vld [vmem:[%s3146_s27 + $0x78] sm:$0xf] }
  0x39   : > { %v2319_v33 = vcombine.low %v302_v16, %v316_v28  ;;  %v1087_v35 = vor.u32 %v1086_v23, %v1083_v12  ;;  %v334_v40 = vrot.slane %v332_v31, 4  ;;  %v335_v41 = vshll.u32 %v228_v15, 16  ;;  %v2428_v12 = vld [vmem:[%s3146_s27 + $0x7c] sm:$0x1]  ;;  %v2429_v31 = vld [vmem:[%s3146_s27 + $0x84] sm:$0xf] }
  0x3a   : > { %v1079_v39 = vsel %vm3171_vm3, %v1074_v29, %v1078_v11  ;;  %v341_v42 = vshll.u32 %v229_v21, 16  ;;  %2661 = vmatpush3.bf16.msra.mxu1 %v2926_v18  ;;  %v324_v46 = vor.u32 %v323_v37, %v320_v30  ;;  %v1095_v47 = vshrl.u32 %v2401_v27, 16  ;;  %v2930_v18 = vld [vmem:[%s3146_s27] ss:$12 sps:$4 sm:$0xff]   ;;  %v2432_v37 = vld [vmem:[%s3146_s27 + $0x94] sm:$0x1] }
  0x3b   : > { %2723 = vmatpush3.bf16.msra.mxu0 %v2925_v60  ;;  %2652 = vmatprep.mubr.msk.bf16.mxu1 %vm390_vm2, %v2319_v33  ;;  %v1088_v45 = vrot.slane %v1087_v35, 4  ;;  %v1098_v48 = vshll.u32 %v2401_v27, 16  ;;  %v329_v50 = vrot.slane %v327_v26, 5  ;;  %v337_v51 = vrot.slane %v335_v41, 5  ;;  %v2933_v35 = vld [vmem:[%s3146_s27 + $0x18] ss:$12 sps:$4 sm:$0xff]  }
  0x3c   : > { %2724 = vmatprep.subr.bf16.mxu0 %v2927_v24  ;;  %v1104_v52 = vshll.u32 %v2402_v32, 16  ;;  %v1109_v53 = vshrl.u32 %v2403_v38, 16  ;;  %2662 = vmatprep.subr.bf16.mxu1 %v2928_v19  ;;  %v325_v55 = vrot.slane %v324_v46, 4  ;;  %v1097_v56 = vrot.slane %v1095_v47, 4  ;;  %v2430_v32 = vld [vmem:[%s3146_s27 + $0x88] sm:$0x1] }
  0x3d   : > { %v1093_v54 = vsel %vm3171_vm3, %v1088_v45, %v1092_v36  ;;  %v1100_v57 = vrot.slane %v1098_v48, 5  ;;  %v338_v59 = vor.u32 %v337_v51, %v334_v40  ;;  %v343_v60 = vrot.slane %v341_v42, 5  ;;  %v2431_v36 = vld [vmem:[%s3146_s27 + $0x90] sm:$0xf] }
  0x3e   : > { %v2415_v58 = vcombine.low %v1079_v39, %v1093_v54  ;;  %v1111_v61 = vrot.slane %v1109_v53, 4  ;;  %2663 = vmatpush3.bf16.msra.mxu1 %v2928_v19  ;;  %v1112_v63 = vshll.u32 %v2403_v38, 16  ;;  %v1118_v0 = vshll.u32 %v2404_v43, 16  ;;  %v2934_v54 = vld [vmem:[%s3596_s1 + $0x48] sm:$0xff]  }
  0x3f   : > { %v1101_v62 = vor.u32 %v1100_v57, %v1097_v56  ;;  %2725 = vmatpush3.bf16.msra.mxu0 %v2927_v24  ;;  %2672 = vmatprep.subr.bf16.mxu1 %v3251_v49  ;;  %v330_v1 = vsel %vm3171_vm3, %v325_v55, %v329_v50  ;;  %v339_v2 = vrot.slane %v338_v59, 4  ;;  %v1106_v7 = vrot.slane %v1104_v52, 5  ;;  %v2936_v59 = vld [vmem:[%s3146_s27 + $0x30] ss:$12 sps:$4 sm:$0xff]  }
  0x40   : > { %2716 = vmatprep.mubr.msk.bf16.mxu0 %vm390_vm2, %v2415_v58  ;;  %2726 = vmatprep.subr.bf16.mxu0 %v2929_v44  ;;  %v1114_v8 = vrot.slane %v1112_v63, 5  ;;  %v1269_v10 = vshrl.u32 %v2425_v3, 16  ;;  %v1272_v13 = vshll.u32 %v2425_v3, 16  ;;  %v1278_v14 = vshll.u32 %v2426_v4, 16  ;;  %v2433_v63 = vld [vmem:[%s3146_s27 + $0x9c] sm:$0xf] }
  0x41   : > { %v1102_v6 = vrot.slane %v1101_v62, 4  ;;  %v344_v11 = vsel %vm3171_vm3, %v339_v2, %v343_v60  ;;  %v1283_v15 = vshrl.u32 %v2427_v9, 16  ;;  %v1120_v20 = vrot.slane %v1118_v0, 5  ;;  %v2937_v62 = vld [vmem:[%s3596_s1 + $0x50] sm:$0xff]   ;;  %v2435_v2 = vld [vmem:[%s3146_s27 + $0xa8] sm:$0xf] }
  0x42   : > { %v2320_v16 = vcombine.low %v330_v1, %v344_v11  ;;  %v1115_v17 = vor.u32 %v1114_v8, %v1111_v61  ;;  %v1271_v21 = vrot.slane %v1269_v10, 4  ;;  %v1274_v22 = vrot.slane %v1272_v13, 5  ;;  %v2434_v1 = vld [vmem:[%s3146_s27 + $0xa0] sm:$0x1]  ;;  %v2436_v4 = vld [vmem:[%s3146_s27 + $0xac] sm:$0x1] }
  0x43   : > { %2727 = vmatpush3.bf16.msra.mxu0 %v2929_v44  ;;  %v1285_v23 = vrot.slane %v1283_v15, 4  ;;  %v1286_v24 = vshll.u32 %v2427_v9, 16  ;;  %v1107_v25 = vsel %vm3171_vm3, %v1102_v6, %v1106_v7  ;;  %v1292_v27 = vshll.u32 %v2428_v12, 16 }
  0x44   : > { %2736 = vmatprep.subr.bf16.mxu0 %v3265_v5  ;;  %2653 = vmatmul.mubr.msk.bf16.gmra.mrb[4].mxu1 %vm390_vm2, %v2320_v16  ;;  %v1116_v26 = vrot.slane %v1115_v17, 4  ;;  %v1275_v28 = vor.u32 %v1274_v22, %v1271_v21  ;;  %v1280_v29 = vrot.slane %v1278_v14, 5  ;;  %v1297_v38 = vshrl.u32 %v2429_v31, 16  ;;  %v2940_v17 = vld [vmem:[%s3596_s1 + $0x58] sm:$0xff]  }
  0x45   : > { %2664 = vmatprep.mubr.msk.bf16.mxu1 %vm390_vm2, %v2930_v18  ;;  %v1288_v30 = vrot.slane %v1286_v24, 5  ;;  %v1294_v33 = vrot.slane %v1292_v27, 5  ;;  %v1300_v42 = vshll.u32 %v2429_v31, 16  ;;  %v1306_v44 = vshll.u32 %v2430_v32, 16  ;;  %v2939_v24 = vld [vmem:[%s3146_s27 + $0x48] ss:$12 sps:$4 sm:$0xff]  }
  0x46   : > { %v1121_v19 = vsel %vm3171_vm3, %v1116_v26, %v1120_v20  ;;  %v1276_v40 = vrot.slane %v1275_v28, 4  ;;  %v1299_v43 = vrot.slane %v1297_v38, 4  ;;  %v1311_v45 = vshrl.u32 %v2431_v36, 16  ;;  %v2438_v26 = vld [vmem:[%s3146_s27 + $0xb8] sm:$0x1]  ;;  %v2938_v28 = vld [vmem:[%s3596_s1 + $0xd0] sm:$0xff]  }
  0x47   : > { %v2416_v39 = vcombine.low %v1107_v25, %v1121_v19  ;;  %v1289_v41 = vor.u32 %v1288_v30, %v1285_v23  ;;  %v1314_v46 = vshll.u32 %v2431_v36, 16  ;;  %v1302_v50 = vrot.slane %v1300_v42, 5  ;;  %v2437_v25 = vld [vmem:[%s3146_s27 + $0xb4] sm:$0xf]  ;;  %v2440_v30 = vld [vmem:[%s3146_s27 + $0xc4] sm:$0x1] }
  0x48   : > { %v1281_v47 = vsel %vm3171_vm3, %v1276_v40, %v1280_v29  ;;  %v1320_v51 = vshll.u32 %v2432_v37, 16  ;;  %v1313_v52 = vrot.slane %v1311_v45, 4  ;;  %v1308_v57 = vrot.slane %v1306_v44, 5  ;;  %v2439_v29 = vld [vmem:[%s3146_s27 + $0xc0] sm:$0xf] }
  0x49   : > { %2717 = vmatmul.mubr.msk.bf16.gmra.mrb[4].mxu0 %vm390_vm2, %v2416_v39  ;;  %v1290_v48 = vrot.slane %v1289_v41, 4  ;;  %v1316_v53 = vrot.slane %v1314_v46, 5  ;;  %v1303_v56 = vor.u32 %v1302_v50, %v1299_v43  ;;  %v1325_v18 = vshrl.u32 %v2433_v63, 16  ;;  %v3329_v43 = vld [vmem:[%s3596_s1 + $0x60] sm:$0xff]  }
  0x4a   : > { %v1322_v58 = vrot.slane %v1320_v51, 5  ;;  %v1328_v6 = vshll.u32 %v2433_v63, 16  ;;  %v1334_v7 = vshll.u32 %v2434_v1, 16  ;;  %v1339_v8 = vshrl.u32 %v2435_v2, 16  ;;  %v589_v50 = vld [vmem:[%s3146_s27] sm:$0xf] }
  0x4b   : > { %v1295_v55 = vsel %vm3171_vm3, %v1290_v48, %v1294_v33  ;;  %v1317_v61 = vor.u32 %v1316_v53, %v1313_v52  ;;  %v1304_v0 = vrot.slane %v1303_v56, 4  ;;  %v1327_v10 = vrot.slane %v1325_v18, 4  ;;  %v2941_v48 = vld [vmem:[%s3596_s1 + $0xd8] sm:$0xff]   ;;  %v590_v53 = vld [vmem:[%s3146_s27 + $0x4] sm:$0x1] }
  0x4c   : > { %v2449_v60 = vcombine.low %v1281_v47, %v1295_v55  ;;  %2665 = vmatmul.mubr.msk.bf16.vlgmr.msra.gmra.mrb[0].mxu1 %vm390_vm2, %v2933_v35  ;;  %v1342_v11 = vshll.u32 %v2435_v2, 16  ;;  %v1348_v12 = vshll.u32 %v2436_v4, 16  ;;  %v1330_v14 = vrot.slane %v1328_v6, 5  ;;  %v592_v55 = vld [vmem:[%s3146_s27 + $0x10] sm:$0x1] }
  0x4d   : > { %2673 = vmatpush3.bf16.msra.mxu1 %v3251_v49  ;;  %2668 = vmatprep.mubr.msk.bf16.mxu1 %vm390_vm2, %v2936_v59  ;;  %v1318_v3 = vrot.slane %v1317_v61, 4  ;;  %v1309_v9 = vsel %vm3171_vm3, %v1304_v0, %v1308_v57  ;;  %v2935_v49 = vld [vmem:[%s3596_s1 + $0xc8] sm:$0xff]   ;;  %v1336_v15 = vrot.slane %v1334_v7, 5  ;;  %v1341_v16 = vrot.slane %v1339_v8, 4  ;;  %v2944_v8 = vld [vmem:[%s3596_s1 + $0xe0] sm:$0xff]  }
  0x4e   : > { %2728 = vmatprep.mubr.msk.bf16.mxu0 %vm390_vm2, %v2449_v60  ;;  %2674 = vmatprep.subr.bf16.mxu1 %v2934_v54  ;;  %v1344_v21 = vrot.slane %v1342_v11, 5  ;;  %v1350_v22 = vrot.slane %v1348_v12, 5  ;;  %v1331_v23 = vor.u32 %v1330_v14, %v1327_v10  ;;  %v1353_v31 = vshrl.u32 %v2437_v25, 16  ;;  %v2943_v10 = vld [vmem:[%s3146_s27 + $0xc] ss:$12 sps:$4 sm:$0xff]  }
  0x4f   : > { %v1323_v13 = vsel %vm3171_vm3, %v1318_v3, %v1322_v58  ;;  %v1356_v32 = vshll.u32 %v2437_v25, 16  ;;  %v1362_v33 = vshll.u32 %v2438_v26, 16  ;;  %v1367_v35 = vshrl.u32 %v2439_v29, 16  ;;  %v593_v12 = vld [vmem:[%s3146_s27 + $0x18] sm:$0xf] }
  0x50   : > { %v2450_v20 = vcombine.low %v1309_v9, %v1323_v13  ;;  %v1345_v27 = vor.u32 %v1344_v21, %v1341_v16  ;;  %v1332_v19 = vrot.slane %v1331_v23, 4  ;;  %v1370_v36 = vshll.u32 %v2439_v29, 16  ;;  %v594_v13 = vld [vmem:[%s3146_s27 + $0x1c] sm:$0x1]  ;;  %v595_v14 = vld [vmem:[%s3146_s27 + $0x24] sm:$0xf] }
  0x51   : > { %2675 = vmatpush3.bf16.msra.mxu1 %v2934_v54  ;;  %v1355_v38 = vrot.slane %v1353_v31, 4  ;;  %v1358_v39 = vrot.slane %v1356_v32, 5  ;;  %v1376_v40 = vshll.u32 %v2440_v30, 16  ;;  %v1364_v46 = vrot.slane %v1362_v33, 5  ;;  %v591_v54 = vld [vmem:[%s3146_s27 + $0xc] sm:$0xf] }
  0x52   : > { %2676 = vmatprep.subr.bf16.mxu1 %v2937_v62  ;;  %2729 = vmatmul.mubr.msk.bf16.vlgmr.msra.gmra.mrb[0].mxu0 %vm390_vm2, %v2450_v20  ;;  %v1346_v37 = vrot.slane %v1345_v27, 4  ;;  %v1337_v41 = vsel %vm3171_vm3, %v1332_v19, %v1336_v15  ;;  %v1372_v42 = vrot.slane %v1370_v36, 5  ;;  %v606_v57 = vshrl.u32 %v589_v50, 16  ;;  %v596_v16 = vld [vmem:[%s3146_s27 + $0x28] sm:$0x1] }
  0x53   : > { %2737 = vmatpush3.bf16.msra.mxu0 %v3265_v5  ;;  %v1369_v5 = vrot.slane %v1367_v35, 4  ;;  %v1359_v45 = vor.u32 %v1358_v39, %v1355_v38  ;;  %v1378_v47 = vrot.slane %v1376_v40, 5  ;;  %v609_v58 = vshll.u32 %v589_v50, 16  ;;  %v2945_v33 = vld [vmem:[%s3146_s27 + $0x24] ss:$12 sps:$4 sm:$0xff]  }
  0x54   : > { %2669 = vmatmul.mubr.msk.bf16.gmra.mrb[4].mxu1 %vm390_vm2, %v2939_v24  ;;  %2738 = vmatprep.subr.bf16.mxu0 %v2935_v49  ;;  %v1351_v44 = vsel %vm3171_vm3, %v1346_v37, %v1350_v22  ;;  %v615_v59 = vshll.u32 %v590_v53, 16  ;;  %v620_v61 = vshrl.u32 %v591_v54, 16  ;;  %v629_v63 = vshll.u32 %v592_v55, 16  ;;  %v2947_v37 = vld [vmem:[%s3596_s1 + $0xe8] sm:$0xff]   ;;  %v597_v39 = vld [vmem:[%s3146_s27 + $0x30] sm:$0xf] }
  0x55   : > { %2677 = vmatpush3.bf16.msra.mxu1 %v2937_v62  ;;  %v2451_v51 = vcombine.low %v1337_v41, %v1351_v44  ;;  %v1373_v52 = vor.u32 %v1372_v42, %v1369_v5  ;;  %v1360_v56 = vrot.slane %v1359_v45, 4  ;;  %v623_v62 = vshll.u32 %v591_v54, 16  ;;  %v598_v40 = vld [vmem:[%s3146_s27 + $0x34] sm:$0x1]  ;;  %v599_v5 = vld [vmem:[%s3146_s27 + $0x3c] sm:$0xf] }
  0x56   : > { %2678 = vmatprep.subr.bf16.mxu1 %v2940_v17  ;;  %v608_v1 = vrot.slane %v606_v57, 4  ;;  %v611_v2 = vrot.slane %v609_v58, 5  ;;  %v617_v18 = vrot.slane %v615_v59, 5  ;;  %v622_v4 = vrot.slane %v620_v61, 4  ;;  %v600_v42 = vld [vmem:[%s3146_s27 + $0x40] sm:$0x1] }
  0x57   : > { %2739 = vmatpush3.bf16.msra.mxu0 %v2935_v49  ;;  %2732 = vmatprep.mubr.msk.bf16.mxu0 %vm390_vm2, %v2451_v51  ;;  %v1374_v60 = vrot.slane %v1373_v52, 4  ;;  %v1365_v0 = vsel %vm3171_vm3, %v1360_v56, %v1364_v46  ;;  %v625_v6 = vrot.slane %v623_v62, 5  ;;  %v631_v7 = vrot.slane %v629_v63, 5  ;;  %v2946_v51 = vld [vmem:[%s3596_s1 + $0x68] sm:$0xff]   ;;  %v2950_v59 = vld [vmem:[%s3596_s1 + $0xf0] sm:$0xff]  }
  0x58   : > { %2740 = vmatprep.subr.bf16.mxu0 %v2938_v28  ;;  %v612_v49 = vor.u32 %v611_v2, %v608_v1  ;;  %v637_v20 = vshll.u32 %v593_v12, 16  ;;  %v643_v21 = vshll.u32 %v594_v13, 16  ;;  %v648_v23 = vshrl.u32 %v595_v14, 16  ;;  %v2949_v63 = vld [vmem:[%s3146_s27 + $0x3c] ss:$12 sps:$4 sm:$0xff]  }
  0x59   : > { %2679 = vmatpush3.bf16.msra.mxu1 %v2940_v17  ;;  %v1379_v3 = vsel %vm3171_vm3, %v1374_v60, %v1378_v47  ;;  %v626_v11 = vor.u32 %v625_v6, %v622_v4  ;;  %v634_v17 = vshrl.u32 %v593_v12, 16  ;;  %v651_v24 = vshll.u32 %v595_v14, 16  ;;  %v601_v1 = vld [vmem:[%s3146_s27 + $0x48] sm:$0xf]  ;;  %v603_v4 = vld [vmem:[%s3146_s27 + $0x54] sm:$0xf] }
  0x5a   : > { %2688 = vmatprep.subr.bf16.mxu1 %v3329_v43  ;;  %v2452_v9 = vcombine.low %v1365_v0, %v1379_v3  ;;  %v613_v15 = vrot.slane %v612_v49, 4  ;;  %v657_v25 = vshll.u32 %v596_v16, 16  ;;  %v645_v29 = vrot.slane %v643_v21, 5  ;;  %v602_v3 = vld [vmem:[%s3146_s27 + $0x4c] sm:$0x1] }
  0x5b   : > { %2741 = vmatpush3.bf16.msra.mxu0 %v2938_v28  ;;  %v627_v22 = vrot.slane %v626_v11, 4  ;;  %v636_v27 = vrot.slane %v634_v17, 4  ;;  %v639_v28 = vrot.slane %v637_v20, 5  ;;  %v650_v31 = vrot.slane %v648_v23, 4  ;;  %v604_v6 = vld [vmem:[%s3146_s27 + $0x58] sm:$0x1] }
  0x5c   : > { %2742 = vmatprep.subr.bf16.mxu0 %v2941_v48  ;;  %2733 = vmatmul.mubr.msk.bf16.gmra.mrb[4].mxu0 %vm390_vm2, %v2452_v9  ;;  %v618_v26 = vsel %vm3171_vm3, %v613_v15, %v617_v18  ;;  %v653_v32 = vrot.slane %v651_v24, 5  ;;  %v659_v19 = vrot.slane %v657_v25, 5  ;;  %v662_v44 = vshrl.u32 %v597_v39, 16  ;;  %v2948_v18 = vld [vmem:[%s3596_s1 + $0x70] sm:$0xff]  }
  0x5d   : > { %2744 = vmatprep.mubr.msk.bf16.mxu0 %vm390_vm2, %v2943_v10  ;;  %v632_v30 = vsel %vm3171_vm3, %v627_v22, %v631_v7  ;;  %v640_v36 = vor.u32 %v639_v28, %v636_v27  ;;  %v665_v46 = vshll.u32 %v597_v39, 16  ;;  %v671_v47 = vshll.u32 %v598_v40, 16  ;;  %v2951_v17 = vld [vmem:[%s3146_s27 + $0x54] ss:$12 sps:$4 sm:$0xff]   ;;  %v2952_v28 = vld [vmem:[%s3596_s1 + $0x78] sm:$0xff]  }
  0x5e   : > { %v2349_v35 = vcombine.low %v618_v26, %v632_v30  ;;  %v654_v38 = vor.u32 %v653_v32, %v650_v31  ;;  %v664_v52 = vrot.slane %v662_v44, 4  ;;  %v679_v53 = vshll.u32 %v599_v5, 16  ;;  %v2489_v30 = vld [vmem:[%s3146_s27 + $0x10] sm:$0xf]  ;;  %v2490_v31 = vld [vmem:[%s3146_s27 + $0x14] sm:$0x1] }
  0x5f   : > { %2743 = vmatpush3.bf16.msra.mxu0 %v2941_v48  ;;  %v641_v41 = vrot.slane %v640_v36, 4  ;;  %v676_v48 = vshrl.u32 %v599_v5, 16  ;;  %v685_v54 = vshll.u32 %v600_v42, 16  ;;  %v667_v56 = vrot.slane %v665_v46, 5  ;;  %v3409_v32 = vld [vmem:[%s3596_s1 + $0x100] sm:$0xff]  }
  0x60   : > { %2752 = vmatprep.subr.bf16.mxu0 %v2944_v8  ;;  %2680 = vmatprep.mubr.msk.bf16.mxu1 %vm390_vm2, %v2349_v35  ;;  %v655_v45 = vrot.slane %v654_v38, 4  ;;  %v673_v57 = vrot.slane %v671_v47, 5  ;;  %v681_v61 = vrot.slane %v679_v53, 5  ;;  %v693_v9 = vshll.u32 %v601_v1, 16  ;;  %v2491_v35 = vld [vmem:[%s3146_s27 + $0x1c] sm:$0xf] }
  0x61   : > { %v646_v50 = vsel %vm3171_vm3, %v641_v41, %v645_v29  ;;  %v678_v58 = vrot.slane %v676_v48, 4  ;;  %v687_v62 = vrot.slane %v685_v54, 5  ;;  %v668_v0 = vor.u32 %v667_v56, %v664_v52  ;;  %v2492_v36 = vld [vmem:[%s3146_s27 + $0x20] sm:$0x1]  ;;  %v2493_v54 = vld [vmem:[%s3146_s27 + $0x28] sm:$0xf] }
  0x62   : > { %v660_v55 = vsel %vm3171_vm3, %v655_v45, %v659_v19  ;;  %v699_v49 = vshll.u32 %v602_v3, 16  ;;  %v704_v11 = vshrl.u32 %v603_v4, 16  ;;  %v707_v12 = vshll.u32 %v603_v4, 16  ;;  %v2495_v56 = vld [vmem:[%s3146_s27 + $0x34] sm:$0xf] }
  0x63   : > { %v2350_v60 = vcombine.low %v646_v50, %v660_v55  ;;  %v682_v2 = vor.u32 %v681_v61, %v678_v58  ;;  %v669_v7 = vrot.slane %v668_v0, 4  ;;  %v713_v13 = vshll.u32 %v604_v6, 16  ;;  %v2494_v55 = vld [vmem:[%s3146_s27 + $0x2c] sm:$0x1]  ;;  %v2496_v58 = vld [vmem:[%s3146_s27 + $0x38] sm:$0x1] }
  0x64   : > { %2745 = vmatmul.mubr.msk.bf16.vlgmr.msra.gmra.mrb[0].mxu0 %vm390_vm2, %v2945_v33  ;;  %v695_v16 = vrot.slane %v693_v9, 5  ;;  %v701_v21 = vrot.slane %v699_v49, 5  ;;  %v706_v22 = vrot.slane %v704_v11, 4  ;;  %v709_v23 = vrot.slane %v707_v12, 5  ;;  %v2954_v33 = vld [vmem:[%s3146_s27 + $0x6c] ss:$12 sps:$4 sm:$0xff]  }
  0x65   : > { %2753 = vmatpush3.bf16.msra.mxu0 %v2944_v8  ;;  %2681 = vmatmul.mubr.msk.bf16.vlgmr.msra.gmra.mrb[0].mxu1 %vm390_vm2, %v2350_v60  ;;  %v690_v8 = vshrl.u32 %v601_v1, 16  ;;  %v683_v10 = vrot.slane %v682_v2, 4  ;;  %v674_v14 = vsel %vm3171_vm3, %v669_v7, %v673_v57  ;;  %v715_v27 = vrot.slane %v713_v13, 5  ;;  %v2958_v13 = vld [vmem:[%s3146_s27 + $0x9c] ss:$12 sps:$4 sm:$0xff]  }
  0x66   : > { %2754 = vmatprep.subr.bf16.mxu0 %v2947_v37  ;;  %2748 = vmatprep.mubr.msk.bf16.mxu0 %vm390_vm2, %v2949_v63  ;;  %v710_v26 = vor.u32 %v709_v23, %v706_v22  ;;  %v1677_v39 = vshll.u32 %v2489_v30, 16  ;;  %v1683_v40 = vshll.u32 %v2490_v31, 16  ;;  %v1688_v41 = vshrl.u32 %v2491_v35, 16  ;;  %v2956_v63 = vld [vmem:[%s3146_s27 + $0x84] ss:$12 sps:$4 sm:$0xff]  }
  0x67   : > { %2689 = vmatpush3.bf16.msra.mxu1 %v3329_v43  ;;  %v692_v15 = vrot.slane %v690_v8, 4  ;;  %v2953_v43 = vld [vmem:[%s3596_s1 + $0xf8] sm:$0xff]   ;;  %v688_v20 = vsel %vm3171_vm3, %v683_v10, %v687_v62  ;;  %v1691_v44 = vshll.u32 %v2491_v35, 16  ;;  %v1697_v45 = vshll.u32 %v2492_v36, 16  ;;  %v3432_v10 = vld [vmem:[%s3596_s1 + $0x108] sm:$0xff]  }
  0x68   : > { %2690 = vmatprep.subr.bf16.mxu1 %v2946_v51  ;;  %v2351_v24 = vcombine.low %v674_v14, %v688_v20  ;;  %v711_v19 = vrot.slane %v710_v26, 4  ;;  %v1679_v47 = vrot.slane %v1677_v39, 5  ;;  %v1690_v48 = vrot.slane %v1688_v41, 4  ;;  %v2497_v14 = vld [vmem:[%s3146_s27 + $0x40] sm:$0xf] }
  0x69   : > { %2755 = vmatpush3.bf16.msra.mxu0 %v2947_v37  ;;  %v696_v25 = vor.u32 %v695_v16, %v692_v15  ;;  %v1674_v37 = vshrl.u32 %v2489_v30, 16  ;;  %v1685_v50 = vrot.slane %v1683_v40, 5  ;;  %v1699_v52 = vrot.slane %v1697_v45, 5  ;;  %v2500_v20 = vld [vmem:[%s3146_s27 + $0x50] sm:$0x1] }
  0x6a   : > { %2756 = vmatprep.subr.bf16.mxu0 %v2950_v59  ;;  %2684 = vmatprep.mubr.msk.bf16.mxu1 %vm390_vm2, %v2351_v24  ;;  %v716_v5 = vsel %vm3171_vm3, %v711_v19, %v715_v27  ;;  %v1705_v60 = vshll.u32 %v2493_v54, 16  ;;  %v1711_v61 = vshll.u32 %v2494_v55, 16  ;;  %v1716_v0 = vshrl.u32 %v2495_v56, 16  ;;  %v2960_v41 = vld [vmem:[%s3146_s27 + $0xb4] ss:$12 sps:$4 sm:$0xff]  }
  0x6b   : > { %2691 = vmatpush3.bf16.msra.mxu1 %v2946_v51  ;;  %v697_v29 = vrot.slane %v696_v25, 4  ;;  %v1676_v42 = vrot.slane %v1674_v37, 4  ;;  %v1693_v51 = vrot.slane %v1691_v44, 5  ;;  %v1719_v1 = vshll.u32 %v2495_v56, 16  ;;  %v2503_v45 = vld [vmem:[%s3146_s27 + $0x64] sm:$0xf] }
  0x6c   : > { %2749 = vmatmul.mubr.msk.bf16.gmra.mrb[4].mxu0 %vm390_vm2, %v2951_v17  ;;  %2692 = vmatprep.subr.bf16.mxu1 %v2948_v18  ;;  %v1725_v2 = vshll.u32 %v2496_v58, 16  ;;  %v1707_v4 = vrot.slane %v1705_v60, 5  ;;  %v1713_v6 = vrot.slane %v1711_v61, 5  ;;  %v1718_v8 = vrot.slane %v1716_v0, 4  ;;  %v2498_v17 = vld [vmem:[%s3146_s27 + $0x44] sm:$0x1] }
  0x6d   : > { %2757 = vmatpush3.bf16.msra.mxu0 %v2950_v59  ;;  %v702_v38 = vsel %vm3171_vm3, %v697_v29, %v701_v21  ;;  %v1680_v53 = vor.u32 %v1679_v47, %v1676_v42  ;;  %v1694_v57 = vor.u32 %v1693_v51, %v1690_v48  ;;  %v1702_v59 = vshrl.u32 %v2493_v54, 16  ;;  %v2502_v42 = vld [vmem:[%s3146_s27 + $0x5c] sm:$0x1] }
  0x6e   : > { %2758 = vmatprep.subr.bf16.mxu0 %v2953_v43  ;;  %v2352_v46 = vcombine.low %v702_v38, %v716_v5  ;;  %v1721_v9 = vrot.slane %v1719_v1, 5  ;;  %v1727_v49 = vrot.slane %v1725_v2, 5  ;;  %v1730_v22 = vshrl.u32 %v2497_v14, 16  ;;  %v3453_v38 = vld [vmem:[%s3596_s1 + $0x110] sm:$0xff]   ;;  %v2501_v5 = vld [vmem:[%s3146_s27 + $0x58] sm:$0xf] }
  0x6f   : > { %2693 = vmatpush3.bf16.msra.mxu1 %v2948_v18  ;;  %v1681_v62 = vrot.slane %v1680_v53, 4  ;;  %v1695_v18 = vrot.slane %v1694_v57, 4  ;;  %v1704_v3 = vrot.slane %v1702_v59, 4  ;;  %v1733_v23 = vshll.u32 %v2497_v14, 16  ;;  %v2526_v2 = vld [vmem:[%s3146_s27 + $0x10] sm:$0x1] }
  0x70   : > { %2694 = vmatprep.subr.bf16.mxu1 %v2952_v28  ;;  %2685 = vmatmul.mubr.msk.bf16.gmra.mrb[4].mxu1 %vm390_vm2, %v2352_v46  ;;  %v1722_v16 = vor.u32 %v1721_v9, %v1718_v8  ;;  %v1739_v24 = vshll.u32 %v2498_v17, 16  ;;  %v1732_v30 = vrot.slane %v1730_v22, 4  ;;  %v2504_v46 = vld [vmem:[%s3146_s27 + $0x68] sm:$0x1]  ;;  %v1758_v47 = vshrl.u32 %v2501_v5, 16 }
  0x71   : > { %2759 = vmatpush3.bf16.msra.mxu0 %v2953_v43  ;;  %2696 = vmatprep.mubr.msk.bf16.mxu1 %vm390_vm2, %v2954_v33  ;;  %v1686_v7 = vsel %vm3171_vm3, %v1681_v62, %v1685_v50  ;;  %v1700_v11 = vsel %vm3171_vm3, %v1695_v18, %v1699_v52  ;;  %v1708_v12 = vor.u32 %v1707_v4, %v1704_v3  ;;  %v2499_v43 = vld [vmem:[%s3146_s27 + $0x4c] sm:$0xf]  ;;  %v1735_v31 = vrot.slane %v1733_v23, 5  ;;  %v3463_v50 = vld [vmem:[%s3596_s1 + $0x118] sm:$0xff]   ;;  %v2535_v23 = vld [vmem:[%s3146_s27 + $0x48] sm:$0xf] }
  0x72   : > { %2768 = vmatprep.subr.bf16.mxu0 %v3409_v32  ;;  %v2513_v15 = vcombine.low %v1686_v7, %v1700_v11  ;;  %v1723_v25 = vrot.slane %v1722_v16, 4  ;;  %v1744_v26 = vshrl.u32 %v2499_v43, 16  ;;  %v1747_v27 = vshll.u32 %v2499_v43, 16  ;;  %v2527_v18 = vld [vmem:[%s3146_s27 + $0x18] sm:$0xf] }
  0x73   : > { %2695 = vmatpush3.bf16.msra.mxu1 %v2952_v28  ;;  %v1709_v21 = vrot.slane %v1708_v12, 4  ;;  %v1753_v28 = vshll.u32 %v2500_v20, 16  ;;  %v1741_v19 = vrot.slane %v1739_v24, 5  ;;  %v1736_v40 = vor.u32 %v1735_v31, %v1732_v30  ;;  %v2528_v7 = vld [vmem:[%s3146_s27 + $0x1c] sm:$0x1] }
  0x74   : > { %2784 = vmatprep.subr.bf16.mxu1 %v3409_v32  ;;  %2760 = vmatprep.mubr.msk.bf16.mxu0 %vm390_vm2, %v2513_v15  ;;  %v1728_v33 = vsel %vm3171_vm3, %v1723_v25, %v1727_v49  ;;  %v1746_v35 = vrot.slane %v1744_v26, 4  ;;  %v1749_v36 = vrot.slane %v1747_v27, 5  ;;  %v1761_v48 = vshll.u32 %v2501_v5, 16  ;;  %v2533_v49 = vld [vmem:[%s3146_s27 + $0x3c] sm:$0xf] }
  0x75   : > { %v1714_v29 = vsel %vm3171_vm3, %v1709_v21, %v1713_v6  ;;  %v1755_v37 = vrot.slane %v1753_v28, 5  ;;  %v1737_v51 = vrot.slane %v1736_v40, 4  ;;  %v1767_v52 = vshll.u32 %v2502_v42, 16  ;;  %v2534_v20 = vld [vmem:[%s3146_s27 + $0x40] sm:$0x1] }
  0x76   : > { %v2514_v39 = vcombine.low %v1714_v29, %v1728_v33  ;;  %v1750_v44 = vor.u32 %v1749_v36, %v1746_v35  ;;  %v1772_v53 = vshrl.u32 %v2503_v45, 16  ;;  %v1775_v54 = vshll.u32 %v2503_v45, 16  ;;  %v2536_v28 = vld [vmem:[%s3146_s27 + $0x4c] sm:$0x1]  ;;  %v2529_v30 = vld [vmem:[%s3146_s27 + $0x24] sm:$0xf] }
  0x77   : > { %v1760_v56 = vrot.slane %v1758_v47, 4  ;;  %v1763_v57 = vrot.slane %v1761_v48, 5  ;;  %v1781_v58 = vshll.u32 %v2504_v46, 16  ;;  %v1742_v59 = vsel %vm3171_vm3, %v1737_v51, %v1741_v19  ;;  %v2531_v51 = vld [vmem:[%s3146_s27 + $0x30] sm:$0xf] }
  0x78   : > { %2697 = vmatmul.mubr.msk.bf16.vlgmr.msra.gmra.mrb[0].mxu1 %vm390_vm2, %v2956_v63  ;;  %2761 = vmatmul.mubr.msk.bf16.vlgmr.msra.gmra.mrb[0].mxu0 %vm390_vm2, %v2514_v39  ;;  %v1751_v55 = vrot.slane %v1750_v44, 4  ;;  %v1769_v60 = vrot.slane %v1767_v52, 5  ;;  %v1774_v61 = vrot.slane %v1772_v53, 4  ;;  %v1777_v62 = vrot.slane %v1775_v54, 5  ;;  %v2525_v63 = vld [vmem:[%s3146_s27 + $0xc] sm:$0xf] }
  0x79   : > { %2788 = vmatpush3.bf16.msra.mxu1 %v3409_v32  ;;  %2700 = vmatprep.mubr.msk.bf16.mxu1 %vm390_vm2, %v2958_v13  ;;  %v1764_v0 = vor.u32 %v1763_v57, %v1760_v56  ;;  %v1783_v1 = vrot.slane %v1781_v58, 5  ;;  %v1932_v3 = vshrl.u32 %v2525_v63, 16  ;;  %v1935_v8 = vshll.u32 %v2525_v63, 16  ;;  %v2530_v44 = vld [vmem:[%s3146_s27 + $0x28] sm:$0x1] }
  0x7a   : > { %2785 = vmatprep.subr.bf16.mxu1 %v3432_v10  ;;  %2769 = vmatpush3.bf16.msra.mxu0 %v3409_v32  ;;  %v1756_v32 = vsel %vm3171_vm3, %v1751_v55, %v1755_v37  ;;  %v1778_v6 = vor.u32 %v1777_v62, %v1774_v61  ;;  %v1941_v9 = vshll.u32 %v2526_v2, 16  ;;  %v1946_v13 = vshrl.u32 %v2527_v18, 16  ;;  %v2532_v52 = vld [vmem:[%s3146_s27 + $0x34] sm:$0x1] }
  0x7b   : > { %2770 = vmatprep.subr.bf16.mxu0 %v3432_v10  ;;  %v2515_v4 = vcombine.low %v1742_v59, %v1756_v32  ;;  %v1765_v11 = vrot.slane %v1764_v0, 4  ;;  %v1934_v12 = vrot.slane %v1932_v3, 4  ;;  %v1949_v14 = vshll.u32 %v2527_v18, 16  ;;  %v2537_v57 = vld [vmem:[%s3146_s27 + $0x54] sm:$0xf] }
  0x7c   : > { %v1779_v15 = vrot.slane %v1778_v6, 4  ;;  %v1937_v16 = vrot.slane %v1935_v8, 5  ;;  %v1943_v17 = vrot.slane %v1941_v9, 5  ;;  %v1955_v43 = vshll.u32 %v2528_v7, 16  ;;  %v2539_v3 = vld [vmem:[%s3146_s27 + $0x60] sm:$0xf] }
  0x7d   : > { %2789 = vmatpush3.bf16.msra.mxu1 %v3432_v10  ;;  %2764 = vmatprep.mubr.msk.bf16.mxu0 %vm390_vm2, %v2515_v4  ;;  %v1948_v21 = vrot.slane %v1946_v13, 4  ;;  %v1951_v22 = vrot.slane %v1949_v14, 5  ;;  %v1988_v24 = vshrl.u32 %v2533_v49, 16  ;;  %v1991_v29 = vshll.u32 %v2533_v49, 16  ;;  %v2540_v49 = vld [vmem:[%s3146_s27 + $0x64] sm:$0x1] }
  0x7e   : > { %2786 = vmatprep.subr.bf16.mxu1 %v3453_v38  ;;  %2771 = vmatpush3.bf16.msra.mxu0 %v3432_v10  ;;  %v1770_v10 = vsel %vm3171_vm3, %v1765_v11, %v1769_v60  ;;  %v1784_v25 = vsel %vm3171_vm3, %v1779_v15, %v1783_v1  ;;  %v1938_v26 = vor.u32 %v1937_v16, %v1934_v12  ;;  %v1957_v27 = vrot.slane %v1955_v43, 5  ;;  %v2538_v1 = vld [vmem:[%s3146_s27 + $0x58] sm:$0x1]  ;;  %s185_s27 = sand.u32 1, %s3024_s13  }
  0x7f   : > { %2772 = vmatprep.subr.bf16.mxu0 %v3453_v38  ;;  %v2516_v31 = vcombine.low %v1770_v10, %v1784_v25  ;;  %v1952_v19 = vor.u32 %v1951_v22, %v1948_v21  ;;  %v1990_v33 = vrot.slane %v1988_v24, 4  ;;  %v1997_v35 = vshll.u32 %v2534_v20, 16  ;;  %s2307_s19 = sshll.u32 %s185_s27, 6  ;;  %s3549_s15 = scalar_lea.sflag [#allocation3], %s185_s27 }
  0x80   : > { %2701 = vmatmul.mubr.msk.bf16.gmra.mrb[4].mxu1 %vm390_vm2, %v2960_v41  ;;  %v1939_v36 = vrot.slane %v1938_v26, 4  ;;  %v1993_v37 = vrot.slane %v1991_v29, 5  ;;  %v2002_v39 = vshrl.u32 %v2535_v23, 16  ;;  %v2005_v40 = vshll.u32 %v2535_v23, 16  ;;  %s187_s21 = scalar_lea.vmem [#allocation2], %s2307_s19 }
  0x81   : > { %2790 = vmatpush3.bf16.msra.mxu1 %v3453_v38  ;;  %2765 = vmatmul.mubr.msk.bf16.gmra.mrb[4].mxu0 %vm390_vm2, %v2516_v31  ;;  %v1953_v41 = vrot.slane %v1952_v19, 4  ;;  %v1999_v5 = vrot.slane %v1997_v35, 5  ;;  %v2011_v42 = vshll.u32 %v2536_v28, 16  ;;  %v1960_v45 = vshrl.u32 %v2529_v30, 16  ;;  %s2220_s26 = sshll.u32 %s187_s21, 4  ;;  %s3542_s26 = int_to_ptr.vmem [resolvable:$true] %s2220_s26 }
  0x82   : > { %2787 = vmatprep.subr.bf16.mxu1 %v3463_v50  ;;  %2773 = vmatpush3.bf16.msra.mxu0 %v3453_v38  ;;  %v1944_v38 = vsel %vm3171_vm3, %v1939_v36, %v1943_v17  ;;  %v1994_v46 = vor.u32 %v1993_v37, %v1990_v33  ;;  %v2004_v47 = vrot.slane %v2002_v39, 4  ;;  %v2007_v48 = vrot.slane %v2005_v40, 5  ;;  %s2962_s4 = scalar_lea.vmem %s3542_s26, 1024  ;;  %p2969_p1 = scmp.lt.s32.totalorder %s3542_s26, %s2967_s6 }
  0x83   : > { %2774 = vmatprep.subr.bf16.mxu0 %v3463_v50  ;;  %v1958_v53 = vsel %vm3171_vm3, %v1953_v41, %v1957_v27  ;;  %v2013_v54 = vrot.slane %v2011_v42, 5  ;;  %v1962_v55 = vrot.slane %v1960_v45, 4  ;;  %v1963_v56 = vshll.u32 %v2529_v30, 16  ;;  %p2963_p12 = scmp.ne.s32.totalorder %s3542_s26, %s2962_s4  ;;  %p2970_p2 = scmp.lt.s32.totalorder %s2968_s7, %s2962_s4 }
  0x84   : > { %v2549_v58 = vcombine.low %v1944_v38, %v1958_v53  ;;  %v1995_v59 = vrot.slane %v1994_v46, 4  ;;  %v2008_v60 = vor.u32 %v2007_v48, %v2004_v47  ;;  %v1969_v61 = vshll.u32 %v2530_v44, 16 }
  0x85   : > { %2791 = vmatpush3.bf16.msra.mxu1 %v3463_v50  ;;  %v1965_v62 = vrot.slane %v1963_v56, 5  ;;  %v1974_v63 = vshrl.u32 %v2531_v51, 16  ;;  %v1977_v32 = vshll.u32 %v2531_v51, 16  ;;  %v1983_v0 = vshll.u32 %v2532_v52, 16  ;;  %v2561_v56 = vld [vmem:[%s3597_s2] ss:$0 sm:$0xff]  ;;  %p2964_p13 = pnand %p2963_p12, %p3105_p4  ;;  %p2971_p3 = por %p2970_p2, %p2969_p1 }
  0x86   : > { %2775 = vmatpush3.bf16.msra.mxu0 %v3463_v50  ;;  %2776 = vmatprep.mubr.msk.bf16.mxu0 %vm390_vm2, %v2549_v58  ;;  %v2000_v50 = vsel %vm3171_vm3, %v1995_v59, %v1999_v5  ;;  %v2009_v2 = vrot.slane %v2008_v60, 4  ;;  %v1971_v18 = vrot.slane %v1969_v61, 5  ;;  %v2016_v4 = vshrl.u32 %v2537_v57, 16 }
  0x87   : > { %v1966_v6 = vor.u32 %v1965_v62, %v1962_v55  ;;  %v1976_v7 = vrot.slane %v1974_v63, 4  ;;  %v1979_v8 = vrot.slane %v1977_v32, 5  ;;  %v1985_v9 = vrot.slane %v1983_v0, 5  ;;  %p2965_p0 = pneg %p2964_p13 }
  0x88   : > { %v2014_v11 = vsel %vm3171_vm3, %v2009_v2, %v2013_v54  ;;  %v2018_v12 = vrot.slane %v2016_v4, 4  ;;  %v2019_v13 = vshll.u32 %v2537_v57, 16  ;;  %v2025_v14 = vshll.u32 %v2538_v1, 16 }
  0x89   : > { %v2551_v15 = vcombine.low %v2000_v50, %v2014_v11  ;;  %v1967_v16 = vrot.slane %v1966_v6, 4  ;;  %v1980_v17 = vor.u32 %v1979_v8, %v1976_v7  ;;  %v2030_v43 = vshrl.u32 %v2539_v3, 16  ;;  %p2972_p5 = pnand %p2971_p3, %p2965_p0 }
  0x8a   : > { %v2021_v20 = vrot.slane %v2019_v13, 5  ;;  %v2033_v10 = vshll.u32 %v2539_v3, 16  ;;  %v2039_v21 = vshll.u32 %v2540_v49, 16  ;;  %v2027_v26 = vrot.slane %v2025_v14, 5 }
  0x8b   : > { %2780 = vmatprep.mubr.msk.bf16.mxu1 %vm390_vm2, %v2551_v15  ;;  %v1972_v22 = vsel %vm3171_vm3, %v1967_v16, %v1971_v18  ;;  %v1981_v23 = vrot.slane %v1980_v17, 4  ;;  %v2032_v24 = vrot.slane %v2030_v43, 4 }
  0x8c   : > { %v2022_v25 = vor.u32 %v2021_v20, %v2018_v12  ;;  %v2035_v27 = vrot.slane %v2033_v10, 5  ;;  %v2041_v19 = vrot.slane %v2039_v21, 5 }
  0x8d   : > { %v1986_v28 = vsel %vm3171_vm3, %v1981_v23, %v1985_v9 }
  0x8e   : > { %v2550_v29 = vcombine.low %v1972_v22, %v1986_v28  ;;  %v2023_v30 = vrot.slane %v2022_v25, 4  ;;  %v2036_v31 = vor.u32 %v2035_v27, %v2032_v24 }
  0x90   : > { %2777 = vmatmul.mubr.msk.bf16.vlgmr.msra.gmra.mrb[0].mxu0 %vm390_vm2, %v2550_v29  ;;  %v2028_v33 = vsel %vm3171_vm3, %v2023_v30, %v2027_v26  ;;  %v2037_v35 = vrot.slane %v2036_v31, 4 }
  0x92   : > { %v2042_v36 = vsel %vm3171_vm3, %v2037_v35, %v2041_v19 }
  0x93   : > { %v2552_v37 = vcombine.low %v2028_v33, %v2042_v36 }
  0x95   : > { %2781 = vmatmul.mubr.msk.bf16.vlgmr.msra.gmra.mrb[8].mxu1 %vm390_vm2, %v2552_v37 }
 0x14b   : > { %v2698_v39 = vpop.f32.mrb[0].mxu1 }
 0x14c   : > { %v955_v40 = vpop.f32.mrb[1].mxu1 }
 0x14d   : > { %v2699_v41 = vpop.f32.mrb[2].mxu1 }
 0x14e   : > { %v958_v5 = vpop.f32.mrb[3].mxu1 }
 0x153   : > { %v2702_v42 = vpop.f32.mrb[4].mxu1 }
 0x154   : > { %v971_v44 = vpop.f32.mrb[5].mxu1  ;;  %v2766_v46 = vpop.f32.mrb[4].mxu0 }
 0x155   : > { %v2703_v45 = vpop.f32.mrb[6].mxu1  ;;  %v2796_v47 = vadd.f32 %v2766_v46, %v2702_v42  ;;  %v1892_v48 = vpop.f32.mrb[5].mxu0 }
 0x156   : > { %v974_v38 = vpop.f32.mrb[7].mxu1  ;;  %v2798_v51 = vadd.f32 %v1892_v48, %v971_v44  ;;  %v2767_v52 = vpop.f32.mrb[6].mxu0 }
 0x157   : > { %v2800_v34 = vadd.f32 %v2767_v52, %v2703_v45  ;;  %v1895_v53 = vpop.f32.mrb[7].mxu0 }
 0x158   : > { %v2802_v54 = vadd.f32 %v1895_v53, %v974_v38 }
 0x163   : > { %v2778_v55 = vpop.f32.mrb[0].mxu0 }
 0x164   : > { %v2792_v57 = vadd.f32 %v2778_v55, %v2698_v39  ;;  %v2134_v58 = vpop.f32.mrb[1].mxu0 }
 0x165   : > { %v2793_v59 = vadd.f32 %v2134_v58, %v955_v40  ;;  %v2779_v60 = vpop.f32.mrb[2].mxu0 }
 0x166   : > { %v2182_v61 = vadd.f32 %v2792_v57, %v2561_v56  ;;  %v2794_v62 = vadd.f32 %v2779_v60, %v2699_v41  ;;  %v2137_v63 = vpop.f32.mrb[3].mxu0 }
 0x167   : > { %v2180_v32 = vadd.f32 %v2793_v59, %v2561_v56  ;;  %v2795_v0 = vadd.f32 %v2137_v63, %v958_v5 }
 0x168   : > { %v2190_v1 = vmax.f32 %v2182_v61, 0.0  ;;  %v2782_v50 = vpop.f32.mrb[8].mxu1  ;;  %v2183_v2 = vadd.f32 %v2794_v62, %v2561_v56 }
 0x169   : > { %v2797_v18 = vadd.f32 %v2796_v47, %v2782_v50  ;;  %v2188_v3 = vmax.f32 %v2180_v32, 0.0  ;;  %v2150_v4 = vpop.f32.mrb[9].mxu1  ;;  %v2181_v6 = vadd.f32 %v2795_v0, %v2561_v56 }
 0x16a   : > { %2198 = vst.msk [vmem:[%s187_s21 + $0x10] sm:$0xff] %vm390_vm2, %v2190_v1  ;;  %v2799_v7 = vadd.f32 %v2798_v51, %v2150_v4  ;;  %v2191_v8 = vmax.f32 %v2183_v2, 0.0  ;;  %v2783_v9 = vpop.f32.mrb[10].mxu1 }
 0x16b   : > { %v2186_v49 = vadd.f32 %v2797_v18, %v2561_v56  ;;  %2196 = vst.msk [vmem:[%s187_s21] sm:$0xff] %vm390_vm2, %v2188_v3  ;;  %v2801_v11 = vadd.f32 %v2800_v34, %v2783_v9  ;;  %v2189_v12 = vmax.f32 %v2181_v6, 0.0  ;;  %v2153_v13 = vpop.f32.mrb[11].mxu1 }
 0x16c   : > { %v2184_v14 = vadd.f32 %v2799_v7, %v2561_v56  ;;  %2199 = vst.msk [vmem:[%s187_s21 + $0x18] sm:$0xff] %vm390_vm2, %v2191_v8  ;;  %v2803_v15 = vadd.f32 %v2802_v54, %v2153_v13 }
 0x16d   : > { %v2194_v16 = vmax.f32 %v2186_v49, 0.0  ;;  %v2187_v17 = vadd.f32 %v2801_v11, %v2561_v56  ;;  %2197 = vst.msk [vmem:[%s187_s21 + $0x8] sm:$0xff] %vm390_vm2, %v2189_v12 }
 0x16e   : > { %v2192_v43 = vmax.f32 %v2184_v14, 0.0  ;;  %v2185_v20 = vadd.f32 %v2803_v15, %v2561_v56 }
 0x16f   : > { %2202 = vst.msk [vmem:[%s187_s21 + $0x30] sm:$0xff] %vm390_vm2, %v2194_v16  ;;  %v2195_v10 = vmax.f32 %v2187_v17, 0.0 }
 0x170   : > { %2200 = vst.msk [vmem:[%s187_s21 + $0x20] sm:$0xff] %vm390_vm2, %v2192_v43  ;;  %v2193_v21 = vmax.f32 %v2185_v20, 0.0 }
 0x171   : > { %2203 = vst.msk [vmem:[%s187_s21 + $0x38] sm:$0xff] %vm390_vm2, %v2195_v10 }
 0x172   : > { %2201 = vst.msk [vmem:[%s187_s21 + $0x28] sm:$0xff] %vm390_vm2, %v2193_v21 }
 0x173   : > { %2975 = shalt.err (!%p2972_p5)
}
 0x174   : > { %s2976_s8 = scalar_lea.hbm %s3540_s30, 1024  ;;  %s2980_s27 = scalar_lea.hbm %s3598_s3, 2048 }
 0x175   : > { %p2977_p6 = scmp.ne.s32.totalorder %s3540_s30, %s2976_s8  ;;  %p2981_p10 = scmp.lt.u32.totalorder %s3540_s30, %s3598_s3 }
 0x176   : > { %p2982_p11 = scmp.lt.u32.totalorder %s2980_s27, %s2976_s8  ;;  %p2984_p13 = scmp.lt.u32.totalorder %s2976_s8, %s3540_s30 }
 0x177   : > { %p2978_p7 = pnand %p2977_p6, %p3105_p4 }
 0x178   : > { %p2983_p12 = por %p2982_p11, %p2981_p10 }
 0x179   : > { %p2979_p9 = pneg %p2978_p7 }
 0x17a   : > { %p2985_p0 = por %p2984_p13, %p2983_p12 }
 0x17c   : > { %p2986_p1 = pnand %p2985_p0, %p2979_p9 }
 0x17e   : > { %2989 = shalt.err (!%p2986_p1)
}
 0x17f   : > { %s3043_s19 = smov 128   ;;  %s3044_s21 = smov 8  }
 0x180   : > { %2857 = dma.vmem_to_hbm [thread:$0]  (%p3105_p4), %s3542_s26, 1024, %s3540_s30, %s3549_s15, %s3043_s19, %s3043_s19, %s3044_s21  }
 0x181 PF: > { %p2863_p2 = scmp.ge.s32.totalorder %s3040_s17, 2  ;;  %s2235_s23 = sand.u32 1, %s3020_s12  }
 0x182   : > { %s2236_s28 = scalar_lea.sflag [#allocation3], %s2235_s23 }
 0x183   : > { %p2860_p3 = pnand %p2863_p2, %p3112_p8 }
 0x185   : > { %3015 = dma.done.wait (!%p2860_p3), %s2236_s28, 1024  }
 0x186   : > { %3017 = vsyncadd (!%p2860_p3), %s2236_s28, 4294966272  ;;  %s16_s17 = sadd.s32 1, %s3040_s17   ;;  %s3603_s12 = smov %s3024_s13 }
 0x187   : > { %p13_p5 = scmp.ge.s32.totalorder %s16_s17, 4   ;;  %s3604_s13 = smov %s3028_s14 }
 0x188   : > { %s3605_s14 = smov %s3118_s25  ;;  %s3606_s15 = smov %s3036_s16 }
 0x189   : > { %s3607_s16 = smov %s3609_s20  ;;  %15 = sbr.rel (!%p13_p5) target bundleno = 4 (0x4), region = 77 }
 0x190   :  { %2241 = vsyncpa [#allocation3], 1 }
 0x191   :  { %2243 = vsyncpa [#allocation3 + $0x1], 1 }

</bundles_post_ra>
